<compile_context>
chip_gen: v7x
topology: tpu7x:2x2x1
jax: 0.10.0
libtpu: 0.0.40
codegen_flags: <defaults>
</compile_context>

<pallas_src>
import functools

import jax
import jax.numpy as jnp
from jax import lax
from jax.experimental import pallas as pl
from jax.experimental.pallas import tpu as pltpu

MV = 16                 # multivector dimension (number of basis blades)
PACK = 8                # original rows packed per 128-lane packed row
LANES = PACK * MV       # 128
JK = MV * MV            # 256
JK_P = PACK * JK        # 2048


def _gp_kernel(x_ref, y_ref, rrep_ref, rtile_ref, w_ref, o_ref, *, chunk_p):
    tile_p = x_ref.shape[0]
    n_chunks = tile_p // chunk_p

    def body(c, carry):
        r = pl.multiple_of(c * chunk_p, chunk_p)
        x = x_ref[pl.ds(r, chunk_p), :]                       # (C, 128)
        y = y_ref[pl.ds(r, chunk_p), :]                       # (C, 128)

        # Lane-dense replication on the MXU (exact: 0/1 block-diag constants).
        x_rep = jnp.dot(x, rrep_ref[...],
                        preferred_element_type=jnp.float32)   # (C, 2048)
        y_tile = jnp.dot(y, rtile_ref[...],
                         preferred_element_type=jnp.float32)  # (C, 2048)

        # outer[n, j*16+k] = x[n, j] * y[n, k]   (per packed sub-row)
        outer = x_rep * y_tile                                # (C, 2048)

        # out[n, i] = sum_{jk} outer[n, jk] * W[jk, i]  -> 128 lane-dense cols
        o_ref[pl.ds(r, chunk_p), :] = jnp.dot(
            outer, w_ref[...],
            preferred_element_type=jnp.float32).astype(o_ref.dtype)
        return carry

    lax.fori_loop(0, n_chunks, body, 0, unroll=True)


def _pick_tile_p(p):
    """Packed-row tile: >= ~8 grid steps (>=4/core on v7x), cap 512, mult of 8."""
    cap = 512
    t = pl.next_power_of_2(max(1, pl.cdiv(p, 8)))
    return max(8, min(cap, t))


def geometric_product(gp, x, y, *, tile_p=None, chunk_p=64):
    """Pallas equivalent of the PyTorch module's forward(x, y)."""
    assert gp.shape == (MV, MV, MV)
    A, B, _ = x.shape
    assert x.shape == (A, B, MV) and y.shape == (A, B, MV)
    N = A * B

    xf = x.reshape(N, MV)
    yf = y.reshape(N, MV)

    # Pad rows only up to a multiple of PACK=8 (needed for the free repack
    # reshape).  The ragged last grid block is handled by Pallas' masked
    # edge-block stores, so no padding to a full tile multiple is needed.
    n_pad = (-N) % PACK
    if n_pad:
        # TODO(synk): for very large N this still copies x/y once in HBM; a
        # tiny tail kernel would avoid even that.
        xf = jnp.pad(xf, ((0, n_pad), (0, 0)))
        yf = jnp.pad(yf, ((0, n_pad), (0, 0)))
    n8 = N + n_pad
    P = n8 // PACK

    # Free lane repack: (n8, 16) -> (P, 128), identical contiguous bytes.
    xp = xf.reshape(P, LANES)
    yp = yf.reshape(P, LANES)

    if tile_p is None:
        tile_p = _pick_tile_p(P)
    chunk_p = max(1, min(chunk_p, tile_p))
    while tile_p % chunk_p:
        chunk_p //= 2

    # Base constants.
    f32 = jnp.float32
    jk = jnp.arange(JK)
    blade = jnp.arange(MV)[:, None]
    r_rep = (blade == (jk // MV)[None, :]).astype(f32)     # (16, 256)
    r_tile = (blade == (jk % MV)[None, :]).astype(f32)     # (16, 256)
    w = jnp.transpose(gp, (1, 2, 0)).reshape(JK, MV).astype(f32)  # (256, 16)

    # 8-way block-diagonal versions matching the packed lane layout.
    eye8 = jnp.eye(PACK, dtype=f32)
    r_rep_b = jnp.kron(eye8, r_rep)     # (128, 2048)
    r_tile_b = jnp.kron(eye8, r_tile)   # (128, 2048)
    w_b = jnp.kron(eye8, w)             # (2048, 128)

    grid_p = pl.cdiv(P, tile_p)

    itemsize = jnp.dtype(x.dtype).itemsize
    cost = pl.CostEstimate(
        flops=(2 * 2 * P * LANES * JK_P        # two replication matmuls
               + P * JK_P                      # elementwise multiply
               + 2 * P * JK_P * LANES),        # main matmul
        transcendentals=0,
        bytes_accessed=(3 * P * LANES * itemsize               # x, y in; out
                        + (2 * LANES * JK_P + JK_P * LANES) * 4),  # constants
    )

    out_p = pl.pallas_call(
        functools.partial(_gp_kernel, chunk_p=chunk_p),
        out_shape=jax.ShapeDtypeStruct((P, LANES), x.dtype),
        grid_spec=pltpu.PrefetchScalarGridSpec(
            num_scalar_prefetch=0,
            grid=(grid_p,),
            in_specs=[
                pl.BlockSpec((tile_p, LANES), lambda i: (i, 0)),   # x rows
                pl.BlockSpec((tile_p, LANES), lambda i: (i, 0)),   # y rows
                pl.BlockSpec((LANES, JK_P), lambda i: (0, 0)),     # R_rep_b  (resident)
                pl.BlockSpec((LANES, JK_P), lambda i: (0, 0)),     # R_tile_b (resident)
                pl.BlockSpec((JK_P, LANES), lambda i: (0, 0)),     # W_b      (resident)
            ],
            out_specs=pl.BlockSpec((tile_p, LANES), lambda i: (i, 0)),
        ),
        compiler_params=pltpu.CompilerParams(
            dimension_semantics=("parallel",),
            vmem_limit_bytes=32 * 1024 * 1024,
        ),
        cost_estimate=cost,
    )(xp, yp, r_rep_b, r_tile_b, w_b)

    # Undo the lane repack (free reshape) and strip padded rows.
    return out_p.reshape(n8, MV)[:N].reshape(A, B, MV)


if __name__ == "__main__":
    key = jax.random.PRNGKey(0)
    k_gp, k_x, k_y, k_x2, k_y2 = jax.random.split(key, 5)

    # Deterministic synthetic geometric-product tensor (the module's __init__
    # just stores a [16, 16, 16] tensor; we build one in-script).
    gp = jax.random.normal(k_gp, (MV, MV, MV), dtype=jnp.float32)

    # Case 1: N = 128 rows (multiple of 8) -> multi-step grid, no padding.
    A, B = 2, 64
    x = jax.random.normal(k_x, (A, B, MV), dtype=jnp.float32)
    y = jax.random.normal(k_y, (A, B, MV), dtype=jnp.float32)

    out = jax.block_until_ready(geometric_product(gp, x, y))
    ref = jnp.einsum("ijk,abj,abk->abi", gp, x, y,
                     precision=jax.lax.Precision.HIGHEST)
    assert out.shape == (A, B, MV), out.shape
    assert jnp.allclose(out, ref, atol=1e-3, rtol=1e-3), \
        float(jnp.max(jnp.abs(out - ref)))

    # Case 2: N = 111 rows -> exercises the minimal (to multiple-of-8) pad and
    # the ragged last grid block handled by masked edge-block stores.
    A2, B2 = 3, 37
    x2 = jax.random.normal(k_x2, (A2, B2, MV), dtype=jnp.float32)
    y2 = jax.random.normal(k_y2, (A2, B2, MV), dtype=jnp.float32)

    out2 = jax.block_until_ready(geometric_product(gp, x2, y2))
    ref2 = jnp.einsum("ijk,abj,abk->abi", gp, x2, y2,
                      precision=jax.lax.Precision.HIGHEST)
    assert out2.shape == (A2, B2, MV), out2.shape
    assert jnp.allclose(out2, ref2, atol=1e-3, rtol=1e-3), \
        float(jnp.max(jnp.abs(out2 - ref2)))

    print("KERNEL_OK")
</pallas_src>

<mosaic_0001>
module attributes {stable_mosaic.version = 11 : i64} {
  func.func @_gp_kernel(%arg0: i32, %arg1: memref<8x128xf32, #tpu.memory_space<vmem>>, %arg2: memref<8x128xf32, #tpu.memory_space<vmem>>, %arg3: memref<128x2048xf32, #tpu.memory_space<vmem>>, %arg4: memref<128x2048xf32, #tpu.memory_space<vmem>>, %arg5: memref<2048x128xf32, #tpu.memory_space<vmem>>, %arg6: memref<8x128xf32, #tpu.memory_space<vmem>>) attributes {dimension_semantics = [#tpu.dimension_semantics<parallel>], iteration_bounds = array<i64: 2>, scalar_prefetch = 0 : i64, scratch_operands = 0 : i64, tpu.core_type = #tpu.core_type<tc>, window_params = [{transform_indices = @transform_0, window_bounds = array<i64: 8, 128>}, {transform_indices = @transform_1, window_bounds = array<i64: 8, 128>}, {pipeline_mode = #tpu.pipeline_mode<synchronous>, transform_indices = @transform_2, window_bounds = array<i64: 128, 2048>}, {pipeline_mode = #tpu.pipeline_mode<synchronous>, transform_indices = @transform_3, window_bounds = array<i64: 128, 2048>}, {pipeline_mode = #tpu.pipeline_mode<synchronous>, transform_indices = @transform_4, window_bounds = array<i64: 2048, 128>}, {transform_indices = @transform_5, window_bounds = array<i64: 8, 128>}]} {
    %c0_i32 = arith.constant 0 : i32
    %c8_i32 = arith.constant 8 : i32
    %0 = arith.muli %c0_i32, %c8_i32 : i32
    %1 = tpu.assume_multiple %0, 8 : i32
    %2 = arith.index_cast %1 : i32 to index
    %c0 = arith.constant 0 : index
    %3 = vector.load %arg1[%2, %c0] : memref<8x128xf32, #tpu.memory_space<vmem>>, vector<8x128xf32>
    %4 = arith.index_cast %1 : i32 to index
    %c0_0 = arith.constant 0 : index
    %5 = vector.load %arg2[%4, %c0_0] : memref<8x128xf32, #tpu.memory_space<vmem>>, vector<8x128xf32>
    %c0_1 = arith.constant 0 : index
    %c0_2 = arith.constant 0 : index
    %6 = vector.load %arg3[%c0_1, %c0_2] : memref<128x2048xf32, #tpu.memory_space<vmem>>, vector<128x2048xf32>
    %cst = arith.constant dense<0.000000e+00> : vector<8x2048xf32>
    %7 = tpu.matmul %3, %6, %cst {dimension_numbers = #tpu.dot_dimension_numbers<[1], [0], [0], [1], [0, 0, 1, 1], [], []>} : vector<8x128xf32>, vector<128x2048xf32>, vector<8x2048xf32> -> vector<8x2048xf32>
    %c0_3 = arith.constant 0 : index
    %c0_4 = arith.constant 0 : index
    %8 = vector.load %arg4[%c0_3, %c0_4] : memref<128x2048xf32, #tpu.memory_space<vmem>>, vector<128x2048xf32>
    %cst_5 = arith.constant dense<0.000000e+00> : vector<8x2048xf32>
    %9 = tpu.matmul %5, %8, %cst_5 {dimension_numbers = #tpu.dot_dimension_numbers<[1], [0], [0], [1], [0, 0, 1, 1], [], []>} : vector<8x128xf32>, vector<128x2048xf32>, vector<8x2048xf32> -> vector<8x2048xf32>
    %10 = arith.mulf %7, %9 : vector<8x2048xf32>
    %c0_6 = arith.constant 0 : index
    %c0_7 = arith.constant 0 : index
    %11 = vector.load %arg5[%c0_6, %c0_7] : memref<2048x128xf32, #tpu.memory_space<vmem>>, vector<2048x128xf32>
    %cst_8 = arith.constant dense<0.000000e+00> : vector<8x128xf32>
    %12 = tpu.matmul %10, %11, %cst_8 {dimension_numbers = #tpu.dot_dimension_numbers<[1], [0], [0], [1], [0, 0, 1, 1], [], []>} : vector<8x2048xf32>, vector<2048x128xf32>, vector<8x128xf32> -> vector<8x128xf32>
    %13 = arith.index_cast %1 : i32 to index
    %c0_9 = arith.constant 0 : index
    %14 = vector.load %arg6[%13, %c0_9] : memref<8x128xf32, #tpu.memory_space<vmem>>, vector<8x128xf32>
    tpu.vector_store %arg6[%13, %c0_9], %12 {strides = array<i32>} : memref<8x128xf32, #tpu.memory_space<vmem>>, vector<8x128xf32>,
    %c1_i32 = arith.constant 1 : i32
    return
  }
  func.func @transform_0(%arg0: i32) -> (i32, i32) {
    %c0_i32 = arith.constant 0 : i32
    %c0_i32_0 = arith.constant 0 : i32
    return %arg0, %c0_i32 : i32, i32
  }
  func.func @transform_1(%arg0: i32) -> (i32, i32) {
    %c0_i32 = arith.constant 0 : i32
    %c0_i32_0 = arith.constant 0 : i32
    return %arg0, %c0_i32 : i32, i32
  }
  func.func @transform_2(%arg0: i32) -> (i32, i32) {
    %c0_i32 = arith.constant 0 : i32
    %c0_i32_0 = arith.constant 0 : i32
    %c0_i32_1 = arith.constant 0 : i32
    return %c0_i32, %c0_i32_0 : i32, i32
  }
  func.func @transform_3(%arg0: i32) -> (i32, i32) {
    %c0_i32 = arith.constant 0 : i32
    %c0_i32_0 = arith.constant 0 : i32
    %c0_i32_1 = arith.constant 0 : i32
    return %c0_i32, %c0_i32_0 : i32, i32
  }
  func.func @transform_4(%arg0: i32) -> (i32, i32) {
    %c0_i32 = arith.constant 0 : i32
    %c0_i32_0 = arith.constant 0 : i32
    %c0_i32_1 = arith.constant 0 : i32
    return %c0_i32, %c0_i32_0 : i32, i32
  }
  func.func @transform_5(%arg0: i32) -> (i32, i32) {
    %c0_i32 = arith.constant 0 : i32
    %c0_i32_0 = arith.constant 0 : i32
    return %arg0, %c0_i32 : i32, i32
  }
}

</mosaic_0001>

<bundles_post_ra>
// kernel: tpu_custom_call.1
= control target key start
LH: loop header
LB: loop body
LE: loop exit
PB: predicated region body
PF: predicated region fallthrough
CT: control target
= control target key end

     0   :  { %s4744_s0 = inlined_call_operand.hbm [shape: f32[16,128], index: 0, kind: input, shape index: {}]   ;;  %s4745_s1 = inlined_call_operand.hbm [shape: f32[16,128], index: 1, kind: input, shape index: {}]   ;;  %s4746_s2 = inlined_call_operand.hbm [shape: f32[128,2048], index: 2, kind: input, shape index: {}]   ;;  %s4747_s3 = inlined_call_operand.hbm [shape: f32[128,2048], index: 3, kind: input, shape index: {}]   ;;  %s4748_s4 = inlined_call_operand.hbm [shape: f32[2048,128], index: 4, kind: input, shape index: {}]   ;;  %s4749_s5 = inlined_call_operand.hbm [shape: f32[16,128], index: 5, kind: output, shape index: {}]  }
   0x1   :  { %4754 = sst [smem:[#allocation17_spill]] %s4746_s2 }
   0x2   :  { %4755 = sst [smem:[#allocation18_spill]] %s4747_s3 }
   0x3   :  { %10 = vsyncpa [#allocation3], 0 }
   0x4   :  { %12 = vsyncpa [#allocation3 + $0x1], 0 }
   0x5   :  { %13 = vsyncpa [#allocation6], 0 }
   0x6   :  { %15 = vsyncpa [#allocation6 + $0x1], 0 }
   0x7   :  { %16 = vsyncpa [#allocation9], 0 }
   0x8   :  { %17 = vsyncpa [#allocation4], 0 }
   0x9   :  { %19 = vsyncpa [#allocation4 + $0x1], 0  ;;  %s4357_s18 = smov 0   ;;  %s4359_s19 = smov 0  }
   0xa   :  { %s4361_s20 = smov 0   ;;  %s4363_s21 = smov 0  }
   0xb LB: > { %s4378_s22 = sadd.s32 4294967295, %s4315_s21   ;;  %s2938_s23 = sadd.s32 4294967294, %s4315_s21   ;;  %s4315_s21 = sphi %s4363_s21, %s4778_s21   ;;  %s4311_s20 = sphi %s4361_s20, %s4777_s20   ;;  %s4307_s19 = sphi %s4359_s19, %s4776_s19   ;;  %s4303_s18 = sphi %s4357_s18, %s4775_s18  }
   0xc   : > { %p45_p0 = scmp.ne.s32.totalorder %s4307_s19, %s4303_s18  ;;  %p4750_p1 = scmp.eq.s32.totalorder %s4378_s22, 0 }
   0xd   : > { %p164_p3 = scmp.eq.s32.totalorder %s2938_s23, 1  ;;  %p2939_p5 = scmp.ge.s32.totalorder %s4315_s21, 1 }
   0xe   : > { %p4387_p4 = por %p4750_p1, %p45_p0  ;;  %p171_p7 = scmp.lt.s32.totalorder %s4315_s21, 3 }
   0xf   : > { %p4392_p6 = por %p164_p3, %p45_p0  ;;  %s4317_s27 = smov [#allocation7]  }
  0x10   : > { %s4756_s24 = scalar_select %p4387_p4, 1, 0 }
  0x11   : > { %s4757_s25 = scalar_select %p4392_p6, 1, 0 }
  0x12   : > { %p4397_p8 = pnand %p2939_p5, %p171_p7  ;;  %s183_s28 = sshll.u32 %s4317_s27, 4  ;;  %s4401_s28 = int_to_ptr.vmem [resolvable:$true] %s183_s28 }
  0x13   : > { %s4318_s30 = smov [#allocation8]   ;;  %s4319_s7 = smov [#allocation10]  }
  0x14   : > { %s4758_s26 = scalar_select %p4397_p8, 1, 0 }
  0x15   : > { %p4025_p9 = pneg %p4397_p8  ;;  %s196_s6 = sshll.u32 %s4318_s30, 4  ;;  %s4412_s6 = int_to_ptr.vmem [resolvable:$true] %s196_s6 }
  0x16   : > { %s4414_s8 = sshll.u32 %s4319_s7, 4  ;;  %s4760_s2 = sld [smem:[#allocation17_spill]]  ;;  %s210_s8 = int_to_ptr.vmem [resolvable:$true] %s4414_s8 }
  0x17   : > { %p4408_p11 = pnand %p4025_p9, %p4750_p1 }
  0x19   : > { %p4424_p13 = pneg %p4408_p11 }
  0x1c   : > { %s4093_s11 = scalar_lea.hbm %s4760_s2, 32768 }
  0x1d   : > { %p4094_p12 = scmp.ne.s32.totalorder %s4760_s2, %s4093_s11  ;;  %p4100_p5 = scmp.lt.u32.totalorder %s4093_s11, %s4760_s2 }
  0x1f   : > { %p4096_p0 = pnand %p4424_p13, %p4094_p12 }
  0x21   : > { %p4097_p3 = pneg %p4096_p0 }
  0x23   : > { %p4102_p7 = pnand %p4100_p5, %p4097_p3 }
  0x25   : > { %4105 = shalt.err (!%p4102_p7)
}
  0x26   : > { %s4106_s17 = scalar_lea.vmem %s4401_s28, 32768  ;;  %p4114_p2 = scmp.lt.s32.totalorder %s4401_s28, %s4401_s28 }
  0x27   : > { %p4107_p9 = scmp.ne.s32.totalorder %s4401_s28, %s4106_s17  ;;  %p4115_p6 = scmp.lt.s32.totalorder %s4106_s17, %s4106_s17 }
  0x29   : > { %p4109_p10 = pnand %p4107_p9, %p4424_p13  ;;  %p4116_p12 = por %p4115_p6, %p4114_p2 }
  0x2b   : > { %p4110_p1 = pneg %p4109_p10 }
  0x2d   : > { %p4117_p0 = pnand %p4116_p12, %p4110_p1 }
  0x2f   : > { %4120 = shalt.err (!%p4117_p0)
}
  0x30   : > { %s4320_s23 = smov 2048   ;;  %s4321_s27 = smov 128  }
  0x31   : > { %4028 = dma.hbm_to_vmem [thread:$0]  (!%p4408_p11), %s4760_s2, 32768, %s4401_s28, [#allocation6], %s4320_s23, %s4320_s23, %s4321_s27  }
  0x32   : > { %s4762_s3 = sld [smem:[#allocation18_spill]] }
  0x38   : > { %s4121_s11 = scalar_lea.hbm %s4762_s3, 32768 }
  0x39   : > { %p4122_p1 = scmp.ne.s32.totalorder %s4762_s3, %s4121_s11  ;;  %p4128_p10 = scmp.lt.u32.totalorder %s4121_s11, %s4762_s3 }
  0x3b   : > { %p4124_p2 = pnand %p4122_p1, %p4424_p13 }
  0x3d   : > { %p4125_p6 = pneg %p4124_p2 }
  0x3f   : > { %p4130_p3 = pnand %p4128_p10, %p4125_p6 }
  0x41   : > { %4133 = shalt.err (!%p4130_p3)
}
  0x42   : > { %s4134_s28 = scalar_lea.vmem %s4412_s6, 32768  ;;  %p4142_p12 = scmp.lt.s32.totalorder %s4412_s6, %s4412_s6 }
  0x43   : > { %p4135_p5 = scmp.ne.s32.totalorder %s4412_s6, %s4134_s28  ;;  %p4143_p0 = scmp.lt.s32.totalorder %s4134_s28, %s4134_s28 }
  0x45   : > { %p4137_p7 = pnand %p4135_p5, %p4424_p13  ;;  %p4144_p1 = por %p4143_p0, %p4142_p12 }
  0x47   : > { %p4138_p9 = pneg %p4137_p7 }
  0x49   : > { %p4145_p2 = pnand %p4144_p1, %p4138_p9 }
  0x4b   : > { %4148 = shalt.err (!%p4145_p2)
}
  0x4c   : > { %4031 = dma.hbm_to_vmem [thread:$0]  (!%p4408_p11), %s4762_s3, 32768, %s4412_s6, [#allocation9], %s4320_s23, %s4320_s23, %s4321_s27  }
  0x4d   : > { %s4149_s10 = scalar_lea.hbm %s4748_s4, 32768 }
  0x4e   : > { %p4150_p6 = scmp.ne.s32.totalorder %s4748_s4, %s4149_s10  ;;  %p4156_p5 = scmp.lt.u32.totalorder %s4149_s10, %s4748_s4 }
  0x50   : > { %p4152_p10 = pnand %p4150_p6, %p4424_p13 }
  0x52   : > { %p4153_p3 = pneg %p4152_p10 }
  0x54   : > { %p4158_p7 = pnand %p4156_p5, %p4153_p3 }
  0x56   : > { %4161 = shalt.err (!%p4158_p7)
}
  0x57   : > { %s4162_s16 = scalar_lea.vmem %s210_s8, 32768  ;;  %p4170_p1 = scmp.lt.s32.totalorder %s210_s8, %s210_s8 }
  0x58   : > { %p4163_p9 = scmp.ne.s32.totalorder %s210_s8, %s4162_s16  ;;  %p4171_p2 = scmp.lt.s32.totalorder %s4162_s16, %s4162_s16 }
  0x5a   : > { %p4165_p12 = pnand %p4163_p9, %p4424_p13  ;;  %p4172_p4 = por %p4171_p2, %p4170_p1 }
  0x5c   : > { %p4166_p0 = pneg %p4165_p12 }
  0x5e   : > { %p4173_p8 = pnand %p4172_p4, %p4166_p0 }
  0x60   : > { %4176 = shalt.err (!%p4173_p8)
}
  0x61   : > { %s4322_s6 = smov 8   ;;  %s4492_s14 = sadd.s32 1, %s4315_s21  }
  0x62   : > { %4034 = dma.hbm_to_vmem [thread:$0]  (!%p4408_p11), %s4748_s4, 32768, %s210_s8, [#allocation9], %s4321_s27, %s4321_s27, %s4322_s6  }
  0x63   : > { %s29_s29 = ssub.s32 %s4315_s21, %s4492_s14  ;;  %s32_s17 = sadd.s32 1, %s4311_s20 }
  0x64   : > { %p30_p4 = scmp.eq.s32.totalorder %s29_s29, 0  ;;  %p39_p8 = scmp.ne.s32.totalorder %s4311_s20, %s4307_s19 }
  0x65   : > { %p40_p13 = scmp.eq.s32.totalorder %s4315_s21, 0  ;;  %p4763_p10 = scmp.eq.s32.totalorder %s4378_s22, 1 }
  0x66   : > { %s4501_s30 = scalar_select %p30_p4, %s4311_s20, %s32_s17  }
  0x67   : > { %p41_p6 = por %p40_p13, %p39_p8  ;;  %p4505_p3 = por %p4763_p10, %p39_p8 }
  0x68   : > { %p4049_p5 = scmp.lt.s32.totalorder %s4315_s21, 2  ;;  %s223_s9 = sand.u32 1, %s4311_s20  }
  0x69   : > { %s4764_s7 = scalar_select %p4505_p3, 1, 0 }
  0x6a   : > { %s4511_s8 = sshll.u32 %s223_s9, 3  ;;  %s2945_s27 = sshll.u32 %s4315_s21, 7 }
  0x6b   : > { %s4517_s12 = scalar_lea.hbm %s4744_s0, %s2945_s27  ;;  %s227_s13 = scalar_lea.vmem [#allocation2], %s4511_s8 }
  0x6c   : > { %s234_s15 = sshll.u32 %s227_s13, 4  ;;  %p4522_p11 = pnand %p4049_p5, %p41_p6  ;;  %s4520_s15 = int_to_ptr.vmem [resolvable:$true] %s234_s15 }
  0x6d   : > { %s4529_s28 = scalar_lea.hbm %s4745_s1, %s2945_s27  ;;  %s241_s29 = sand.u32 1, %s4315_s21  }
  0x6e   : > { %s224_s17 = scalar_lea.sflag [#allocation3], %s223_s9  ;;  %s4177_s10 = scalar_lea.hbm %s4517_s12, 128 }
  0x6f   : > { %p4178_p7 = scmp.ne.s32.totalorder %s4517_s12, %s4177_s10  ;;  %p4179_p9 = pneg %p4522_p11 }
  0x70   : > { %s4182_s2 = scalar_lea.hbm %s4744_s0, 256  ;;  %p4183_p1 = scmp.lt.u32.totalorder %s4517_s12, %s4744_s0 }
  0x71   : > { %p4180_p12 = pnand %p4179_p9, %p4178_p7  ;;  %p4184_p2 = scmp.lt.u32.totalorder %s4182_s2, %s4177_s10 }
  0x72   : > { %p4186_p8 = scmp.lt.u32.totalorder %s4177_s10, %s4517_s12 }
  0x73   : > { %p4181_p0 = pneg %p4180_p12  ;;  %p4185_p4 = por %p4184_p2, %p4183_p1 }
  0x75   : > { %p4187_p13 = por %p4186_p8, %p4185_p4 }
  0x77   : > { %p4188_p6 = pnand %p4187_p13, %p4181_p0 }
  0x79   : > { %4191 = shalt.err (!%p4188_p6)
}
  0x7a   : > { %s4192_s9 = scalar_lea.vmem %s4520_s15, 128  ;;  %s4323_s27 = smov [#allocation2]  }
  0x7b   : > { %p4193_p10 = scmp.ne.s32.totalorder %s4520_s15, %s4192_s9  ;;  %s4197_s23 = sshll.u32 %s4323_s27, 4  ;;  %s4198_s23 = int_to_ptr.vmem [resolvable:$false] %s4197_s23 }
  0x7c   : > { %s4199_s3 = scalar_lea.vmem %s4198_s23, 256  ;;  %p4200_p12 = scmp.lt.s32.totalorder %s4520_s15, %s4198_s23 }
  0x7d   : > { %p4195_p5 = pnand %p4193_p10, %p4179_p9  ;;  %p4201_p1 = scmp.lt.s32.totalorder %s4199_s3, %s4192_s9 }
  0x7f   : > { %p4196_p7 = pneg %p4195_p5  ;;  %p4202_p2 = por %p4201_p1, %p4200_p12 }
  0x81   : > { %p4203_p4 = pnand %p4202_p2, %p4196_p7 }
  0x83   : > { %4206 = shalt.err (!%p4203_p4)
}
  0x84   : > { %4038 = dma.hbm_to_vmem [thread:$0]  (!%p4522_p11), %s4517_s12, 128, %s4520_s15, %s224_s17  }
  0x85   : > { %s245_s2 = scalar_lea.vmem [#allocation5], %s4511_s8  ;;  %s242_s11 = scalar_lea.sflag [#allocation6], %s241_s29 }
  0x86   : > { %s252_s10 = sshll.u32 %s245_s2, 4  ;;  %s4207_s13 = scalar_lea.hbm %s4529_s28, 128  ;;  %s253_s10 = int_to_ptr.vmem [resolvable:$true] %s252_s10 }
  0x87   : > { %p4208_p0 = scmp.ne.s32.totalorder %s4529_s28, %s4207_s13  ;;  %s4212_s27 = scalar_lea.hbm %s4745_s1, 256 }
  0x88   : > { %p4213_p6 = scmp.lt.u32.totalorder %s4529_s28, %s4745_s1  ;;  %p4214_p10 = scmp.lt.u32.totalorder %s4212_s27, %s4207_s13 }
  0x89   : > { %p4210_p8 = pnand %p4208_p0, %p4179_p9  ;;  %p4216_p7 = scmp.lt.u32.totalorder %s4207_s13, %s4529_s28 }
  0x8a   : > { %p4215_p5 = por %p4214_p10, %p4213_p6 }
  0x8b   : > { %p4211_p13 = pneg %p4210_p8 }
  0x8c   : > { %p4217_p12 = por %p4216_p7, %p4215_p5 }
  0x8e   : > { %p4218_p1 = pnand %p4217_p12, %p4211_p13 }
  0x90   : > { %4221 = shalt.err (!%p4218_p1)
}
  0x91   : > { %s4222_s8 = scalar_lea.vmem %s253_s10, 128  ;;  %s4324_s12 = smov [#allocation5]  }
  0x92   : > { %p4223_p2 = scmp.ne.s32.totalorder %s253_s10, %s4222_s8  ;;  %s4227_s15 = sshll.u32 %s4324_s12, 4  ;;  %s4228_s15 = int_to_ptr.vmem [resolvable:$false] %s4227_s15 }
  0x93   : > { %s4229_s29 = scalar_lea.vmem %s4228_s15, 256  ;;  %p4230_p8 = scmp.lt.s32.totalorder %s253_s10, %s4228_s15 }
  0x94   : > { %p4225_p4 = pnand %p4223_p2, %p4179_p9  ;;  %p4231_p3 = scmp.lt.s32.totalorder %s4229_s29, %s4222_s8 }
  0x96   : > { %p4226_p0 = pneg %p4225_p4  ;;  %p4232_p6 = por %p4231_p3, %p4230_p8 }
  0x98   : > { %p4233_p10 = pnand %p4232_p6, %p4226_p0 }
  0x9a   : > { %4236 = shalt.err (!%p4233_p10)
}
  0x9b   : > { %4041 = dma.hbm_to_vmem [thread:$0]  (!%p4522_p11), %s4529_s28, 128, %s253_s10, %s242_s11  }
  0x9c   : > { %p4766_p13 = scmp.ne.s32.totalorder %s4758_s26, 0 }
  0x9d   : > { %s4582_s17 = sand.u32 (!%p4766_p13), 1, %s4307_s19   ;;  %p4767_p3 = scmp.ne.s32.totalorder (!%p4766_p13), %s4756_s24, 0 }
  0x9e   : > { %261 = sbr.rel (%p4766_p13) target bundleno = 885 (0x375), region = 40  ;;  %s4585_s2 = sshll.u32 (!%p4766_p13), %s4582_s17, 3 }
  0x9f   : > { %s264_s13 = scalar_lea.sflag (!%p4766_p13), [#allocation3], %s4582_s17  ;;  %s267_s6 = scalar_lea.vmem (!%p4766_p13), [#allocation2], %s4585_s2 }
  0xa5   : > { %4282 = dma.done.wait (%p4767_p3), %s264_s13, 128  }
  0xa6   : > { %4284 = vsyncadd (%p4767_p3), %s264_s13, 4294967168  ;;  %s272_s26 = sand.u32 1, %s4378_s22   ;;  %s276_s28 = scalar_lea.vmem [#allocation5], %s4585_s2 }
  0xa7   : > { %s273_s16 = scalar_lea.sflag [#allocation6], %s272_s26 }
  0xa8   : > { %4286 = dma.done.wait (%p4767_p3), %s273_s16, 128  }
  0xa9   : > { %4288 = vsyncadd (%p4767_p3), %s273_s16, 4294967168  ;;  %p4768_p11 = scmp.eq.s32.totalorder %s4378_s22, 0 }
  0xab   : > { %4290 = dma.done.wait (%p4768_p11), [#allocation6], 32768   ;;  %p4769_p9 = pmov %p4768_p11 }
  0xad   : > { %4292 = vsyncadd (%p4769_p9), [#allocation6], 4294934528  ;;  %p4770_p5 = pmov %p4769_p9 }
  0xaf   : > { %4294 = dma.done.wait (%p4770_p5), [#allocation9], 65536   ;;  %p4771_p7 = pmov %p4770_p5 }
  0xb0   : > { %v4325_v0 = vmov 0.0   ;;  %v323_v1 = vld [vmem:[#allocation7 + $0x8] sm:$0xff]  ;;  %v325_v3 = vld [vmem:[#allocation7 + $0x18] sm:$0xff]  ;;  %v322_v6 = vld [vmem:[#allocation7] sm:$0xff]  ;;  %s2956_s24 = sshll.u32 %s4378_s22, 7  ;;  %s319_s10 = scalar_lea.vmem [#allocation11], %s4585_s2 }
  0xb1   : > { %4296 = vsyncadd (%p4771_p7), [#allocation9], 4294901760  ;;  %642 = vmatprep.mubr.f32.mxu0 %v4325_v0  ;;  %713 = vmatprep.mubr.f32.mxu1 %v4325_v0  ;;  %v339_v2 = vld [vmem:[#allocation7 + $0x88] sm:$0xff]  ;;  %v341_v5 = vld [vmem:[#allocation7 + $0x98] sm:$0xff]  ;;  %s2817_s11 = sshll.u32 %s319_s10, 4  ;;  %s4700_s23 = scalar_lea.hbm %s4749_s5, %s2956_s24  ;;  %s4702_s11 = int_to_ptr.vmem [resolvable:$true] %s2817_s11 }
  0xb2   : > { %v3239_v4 = vpack.c.bf16 %v339_v2, %v323_v1  ;;  %v338_v7 = vld [vmem:[#allocation7 + $0x80] sm:$0xff]  ;;  %v3271_v8 = vpack.c.bf16 %v341_v5, %v325_v3  ;;  %v324_v10 = vld [vmem:[#allocation7 + $0x10] sm:$0xff]  ;;  %v355_v12 = vld [vmem:[#allocation7 + $0x108] sm:$0xff]  ;;  %s2804_s3 = scalar_lea.sflag [#allocation4], %s4582_s17  ;;  %s4237_s8 = scalar_lea.vmem %s4702_s11, 128 }
  0xb3   : > { %v3241_v9 = vpack.c.bf16 %v338_v7, %v322_v6  ;;  %v340_v11 = vld [vmem:[#allocation7 + $0x90] sm:$0xff]  ;;  %v371_v14 = vld [vmem:[#allocation7 + $0x188] sm:$0xff]  ;;  %v357_v15 = vld [vmem:[#allocation7 + $0x118] sm:$0xff]  ;;  %p4238_p12 = scmp.ne.s32.totalorder %s4702_s11, %s4237_s8  ;;  %p4772_p1 = scmp.ne.s32.totalorder %s4764_s7, 0 }
  0xb4   : > { %3240 = vmatprep.subr.bf16.mxu0 %v3239_v4  ;;  %v3273_v13 = vpack.c.bf16 %v340_v11, %v324_v10  ;;  %v373_v16 = vld [vmem:[#allocation7 + $0x198] sm:$0xff]  ;;  %3272 = vmatprep.subr.bf16.mxu1 %v3271_v8  ;;  %v3243_v17 = vpack.c.bf16 %v371_v14, %v355_v12  ;;  %v354_v19 = vld [vmem:[#allocation7 + $0x100] sm:$0xff]  ;;  %v356_v21 = vld [vmem:[#allocation7 + $0x110] sm:$0xff]  ;;  %s4326_s22 = smov [#allocation11]  }
  0xb5   : > { %3242 = vmatpush1.bf16.msra.mxu0 %v3241_v9  ;;  %v3275_v18 = vpack.c.bf16 %v373_v16, %v357_v15  ;;  %v370_v20 = vld [vmem:[#allocation7 + $0x180] sm:$0xff]  ;;  %v372_v23 = vld [vmem:[#allocation7 + $0x190] sm:$0xff]  ;;  %v387_v24 = vld [vmem:[#allocation7 + $0x208] sm:$0xff]  ;;  %p4239_p2 = pnand %p4238_p12, %p4772_p1  ;;  %s4241_s12 = sshll.u32 %s4326_s22, 4  ;;  %s4242_s12 = int_to_ptr.vmem [resolvable:$false] %s4241_s12 }
  0xb6   : > { %3274 = vmatpush1.bf16.msra.mxu1 %v3273_v13  ;;  %v3245_v22 = vpack.c.bf16 %v370_v20, %v354_v19  ;;  %v403_v25 = vld [vmem:[#allocation7 + $0x288] sm:$0xff]  ;;  %3244 = vmatprep.subr.bf16.mxu0 %v3243_v17  ;;  %v3277_v26 = vpack.c.bf16 %v372_v23, %v356_v21  ;;  %v389_v28 = vld [vmem:[#allocation7 + $0x218] sm:$0xff]  ;;  %v386_v30 = vld [vmem:[#allocation7 + $0x200] sm:$0xff]  ;;  %s4243_s15 = scalar_lea.vmem %s4242_s12, 256  ;;  %p4244_p0 = scmp.lt.s32.totalorder %s4702_s11, %s4242_s12 }
  0xb7   : > { %3276 = vmatprep.subr.bf16.mxu1 %v3275_v18  ;;  %v3247_v27 = vpack.c.bf16 %v403_v25, %v387_v24  ;;  %v405_v29 = vld [vmem:[#allocation7 + $0x298] sm:$0xff]  ;;  %v402_v32 = vld [vmem:[#allocation7 + $0x280] sm:$0xff]  ;;  %v388_v33 = vld [vmem:[#allocation7 + $0x210] sm:$0xff]  ;;  %p4240_p4 = pneg %p4239_p2  ;;  %p4245_p8 = scmp.lt.s32.totalorder %s4243_s15, %s4237_s8 }
  0xb8   : > { %v3279_v31 = vpack.c.bf16 %v405_v29, %v389_v28  ;;  %v404_v34 = vld [vmem:[#allocation7 + $0x290] sm:$0xff]  ;;  %v3249_v35 = vpack.c.bf16 %v402_v32, %v386_v30  ;;  %v419_v36 = vld [vmem:[#allocation7 + $0x308] sm:$0xff]  ;;  %v421_v38 = vld [vmem:[#allocation7 + $0x318] sm:$0xff] }
  0xb9   : > { %3246 = vmatpush1.bf16.msra.mxu0 %v3245_v22  ;;  %v435_v37 = vld [vmem:[#allocation7 + $0x388] sm:$0xff]  ;;  %v3281_v39 = vpack.c.bf16 %v404_v34, %v388_v33  ;;  %v437_v41 = vld [vmem:[#allocation7 + $0x398] sm:$0xff]  ;;  %v418_v42 = vld [vmem:[#allocation7 + $0x300] sm:$0xff]  ;;  %p4246_p6 = por %p4245_p8, %p4244_p0 }
  0xba   : > { %3278 = vmatpush1.bf16.msra.mxu1 %v3277_v26  ;;  %3248 = vmatprep.subr.bf16.mxu0 %v3247_v27  ;;  %v3251_v40 = vpack.c.bf16 %v435_v37, %v419_v36  ;;  %v434_v43 = vld [vmem:[#allocation7 + $0x380] sm:$0xff]  ;;  %v3283_v44 = vpack.c.bf16 %v437_v41, %v421_v38  ;;  %v420_v45 = vld [vmem:[#allocation7 + $0x310] sm:$0xff]  ;;  %v451_v47 = vld [vmem:[#allocation7 + $0x408] sm:$0xff] }
  0xbb   : > { %3280 = vmatprep.subr.bf16.mxu1 %v3279_v31  ;;  %v436_v46 = vld [vmem:[#allocation7 + $0x390] sm:$0xff]  ;;  %v467_v48 = vld [vmem:[#allocation7 + $0x488] sm:$0xff]  ;;  %v453_v49 = vld [vmem:[#allocation7 + $0x418] sm:$0xff]  ;;  %v3253_v51 = vpack.c.bf16 %v434_v43, %v418_v42  ;;  %p4247_p10 = pnand %p4246_p6, %p4240_p4 }
  0xbc   : > { %v469_v50 = vld [vmem:[#allocation7 + $0x498] sm:$0xff]  ;;  %v3285_v52 = vpack.c.bf16 %v436_v46, %v420_v45  ;;  %v3255_v53 = vpack.c.bf16 %v467_v48, %v451_v47  ;;  %v450_v54 = vld [vmem:[#allocation7 + $0x400] sm:$0xff]  ;;  %v452_v56 = vld [vmem:[#allocation7 + $0x410] sm:$0xff] }
  0xbd   : > { %3250 = vmatpush1.bf16.msra.mxu0 %v3249_v35  ;;  %v466_v55 = vld [vmem:[#allocation7 + $0x480] sm:$0xff]  ;;  %v3287_v57 = vpack.c.bf16 %v469_v50, %v453_v49  ;;  %v468_v58 = vld [vmem:[#allocation7 + $0x490] sm:$0xff]  ;;  %v483_v59 = vld [vmem:[#allocation7 + $0x508] sm:$0xff] }
  0xbe   : > { %3282 = vmatpush1.bf16.msra.mxu1 %v3281_v39  ;;  %3252 = vmatprep.subr.bf16.mxu0 %v3251_v40  ;;  %v499_v60 = vld [vmem:[#allocation7 + $0x588] sm:$0xff]  ;;  %v485_v61 = vld [vmem:[#allocation7 + $0x518] sm:$0xff]  ;;  %v3257_v63 = vpack.c.bf16 %v466_v55, %v450_v54  ;;  %v3289_v1 = vpack.c.bf16 %v468_v58, %v452_v56  ;;  %v482_v3 = vld [vmem:[#allocation7 + $0x500] sm:$0xff] }
  0xbf   : > { %3284 = vmatprep.subr.bf16.mxu1 %v3283_v44  ;;  %v501_v62 = vld [vmem:[#allocation7 + $0x598] sm:$0xff]  ;;  %v3259_v2 = vpack.c.bf16 %v499_v60, %v483_v59  ;;  %v498_v4 = vld [vmem:[#allocation7 + $0x580] sm:$0xff]  ;;  %v484_v5 = vld [vmem:[#allocation7 + $0x510] sm:$0xff] }
  0xc0   : > { %v3291_v6 = vpack.c.bf16 %v501_v62, %v485_v61  ;;  %v500_v7 = vld [vmem:[#allocation7 + $0x590] sm:$0xff]  ;;  %v515_v8 = vld [vmem:[#allocation7 + $0x608] sm:$0xff]  ;;  %v517_v10 = vld [vmem:[#allocation7 + $0x618] sm:$0xff]  ;;  %v3261_v12 = vpack.c.bf16 %v498_v4, %v482_v3 }
  0xc1   : > { %3254 = vmatpush1.bf16.msra.mxu0 %v3253_v51  ;;  %v531_v9 = vld [vmem:[#allocation7 + $0x688] sm:$0xff]  ;;  %v533_v11 = vld [vmem:[#allocation7 + $0x698] sm:$0xff]  ;;  %v3293_v13 = vpack.c.bf16 %v500_v7, %v484_v5  ;;  %v514_v15 = vld [vmem:[#allocation7 + $0x600] sm:$0xff] }
  0xc2   : > { %3286 = vmatpush1.bf16.msra.mxu1 %v3285_v52  ;;  %3256 = vmatprep.subr.bf16.mxu0 %v3255_v53  ;;  %v3263_v14 = vpack.c.bf16 %v531_v9, %v515_v8  ;;  %v530_v16 = vld [vmem:[#allocation7 + $0x680] sm:$0xff]  ;;  %v516_v17 = vld [vmem:[#allocation7 + $0x610] sm:$0xff]  ;;  %v3295_v18 = vpack.c.bf16 %v533_v11, %v517_v10  ;;  %v547_v20 = vld [vmem:[#allocation7 + $0x708] sm:$0xff] }
  0xc3   : > { %3288 = vmatprep.subr.bf16.mxu1 %v3287_v57  ;;  %v532_v19 = vld [vmem:[#allocation7 + $0x690] sm:$0xff]  ;;  %v563_v21 = vld [vmem:[#allocation7 + $0x788] sm:$0xff]  ;;  %v549_v22 = vld [vmem:[#allocation7 + $0x718] sm:$0xff]  ;;  %v3265_v24 = vpack.c.bf16 %v530_v16, %v514_v15 }
  0xc4   : > { %v565_v23 = vld [vmem:[#allocation7 + $0x798] sm:$0xff]  ;;  %v3297_v25 = vpack.c.bf16 %v532_v19, %v516_v17  ;;  %v3267_v26 = vpack.c.bf16 %v563_v21, %v547_v20  ;;  %v546_v27 = vld [vmem:[#allocation7 + $0x700] sm:$0xff]  ;;  %v548_v29 = vld [vmem:[#allocation7 + $0x710] sm:$0xff] }
  0xc5   : > { %3258 = vmatpush1.bf16.msra.mxu0 %v3257_v63  ;;  %v562_v28 = vld [vmem:[#allocation7 + $0x780] sm:$0xff]  ;;  %v3299_v30 = vpack.c.bf16 %v565_v23, %v549_v22  ;;  %v564_v31 = vld [vmem:[#allocation7 + $0x790] sm:$0xff]  ;;  %v327_v32 = vld [vmem:[#allocation7 + $0x28] sm:$0xff] }
  0xc6   : > { %3290 = vmatpush1.bf16.msra.mxu1 %v3289_v1  ;;  %3260 = vmatprep.subr.bf16.mxu0 %v3259_v2  ;;  %v343_v33 = vld [vmem:[#allocation7 + $0xa8] sm:$0xff]  ;;  %v329_v34 = vld [vmem:[#allocation7 + $0x38] sm:$0xff]  ;;  %v3269_v36 = vpack.c.bf16 %v562_v28, %v546_v27  ;;  %v3301_v37 = vpack.c.bf16 %v564_v31, %v548_v29  ;;  %v326_v39 = vld [vmem:[#allocation7 + $0x20] sm:$0xff] }
  0xc7   : > { %3292 = vmatprep.subr.bf16.mxu1 %v3291_v6  ;;  %v345_v35 = vld [vmem:[#allocation7 + $0xb8] sm:$0xff]  ;;  %v3303_v38 = vpack.c.bf16 %v343_v33, %v327_v32  ;;  %v342_v40 = vld [vmem:[#allocation7 + $0xa0] sm:$0xff]  ;;  %v328_v41 = vld [vmem:[#allocation7 + $0x30] sm:$0xff] }
  0xc8   : > { %v3335_v42 = vpack.c.bf16 %v345_v35, %v329_v34  ;;  %v344_v43 = vld [vmem:[#allocation7 + $0xb0] sm:$0xff]  ;;  %v359_v44 = vld [vmem:[#allocation7 + $0x128] sm:$0xff]  ;;  %v361_v46 = vld [vmem:[#allocation7 + $0x138] sm:$0xff]  ;;  %v3305_v49 = vpack.c.bf16 %v342_v40, %v326_v39 }
  0xc9   : > { %3262 = vmatpush1.bf16.msra.mxu0 %v3261_v12  ;;  %v375_v45 = vld [vmem:[#allocation7 + $0x1a8] sm:$0xff]  ;;  %v377_v47 = vld [vmem:[#allocation7 + $0x1b8] sm:$0xff]  ;;  %v3337_v50 = vpack.c.bf16 %v344_v43, %v328_v41  ;;  %v358_v52 = vld [vmem:[#allocation7 + $0x120] sm:$0xff] }
  0xca   : > { %3294 = vmatpush1.bf16.msra.mxu1 %v3293_v13  ;;  %3264 = vmatprep.subr.bf16.mxu0 %v3263_v14  ;;  %v4611_v48 = vld [vmem:[%s267_s6] sm:$0xff]  ;;  %v3307_v51 = vpack.c.bf16 %v375_v45, %v359_v44  ;;  %v360_v54 = vld [vmem:[#allocation7 + $0x130] sm:$0xff]  ;;  %v3339_v55 = vpack.c.bf16 %v377_v47, %v361_v46  ;;  %v393_v59 = vld [vmem:[#allocation7 + $0x238] sm:$0xff] }
  0xcb   : > { %3296 = vmatprep.subr.bf16.mxu1 %v3295_v18  ;;  %v374_v53 = vld [vmem:[#allocation7 + $0x1a0] sm:$0xff]  ;;  %v376_v56 = vld [vmem:[#allocation7 + $0x1b0] sm:$0xff]  ;;  %v391_v57 = vld [vmem:[#allocation7 + $0x228] sm:$0xff] }
  0xcc   : > { %v407_v58 = vld [vmem:[#allocation7 + $0x2a8] sm:$0xff]  ;;  %v409_v60 = vld [vmem:[#allocation7 + $0x2b8] sm:$0xff]  ;;  %v3309_v61 = vpack.c.bf16 %v374_v53, %v358_v52  ;;  %v3341_v62 = vpack.c.bf16 %v376_v56, %v360_v54  ;;  %v390_v1 = vld [vmem:[#allocation7 + $0x220] sm:$0xff] }
  0xcd   : > { %3266 = vmatpush1.bf16.msra.mxu0 %v3265_v24  ;;  %v3311_v63 = vpack.c.bf16 %v407_v58, %v391_v57  ;;  %v406_v2 = vld [vmem:[#allocation7 + $0x2a0] sm:$0xff]  ;;  %v392_v3 = vld [vmem:[#allocation7 + $0x230] sm:$0xff]  ;;  %v3343_v4 = vpack.c.bf16 %v409_v60, %v393_v59  ;;  %v423_v6 = vld [vmem:[#allocation7 + $0x328] sm:$0xff] }
  0xce   : > { %3298 = vmatpush1.bf16.msra.mxu1 %v3297_v25  ;;  %3268 = vmatprep.subr.bf16.mxu0 %v3267_v26  ;;  %v408_v5 = vld [vmem:[#allocation7 + $0x2b0] sm:$0xff]  ;;  %v439_v7 = vld [vmem:[#allocation7 + $0x3a8] sm:$0xff]  ;;  %v425_v8 = vld [vmem:[#allocation7 + $0x338] sm:$0xff]  ;;  %v3313_v10 = vpack.c.bf16 %v406_v2, %v390_v1 }
  0xcf   : > { %3300 = vmatprep.subr.bf16.mxu1 %v3299_v30  ;;  %v441_v9 = vld [vmem:[#allocation7 + $0x3b8] sm:$0xff]  ;;  %v3345_v11 = vpack.c.bf16 %v408_v5, %v392_v3  ;;  %v3315_v12 = vpack.c.bf16 %v439_v7, %v423_v6  ;;  %v422_v13 = vld [vmem:[#allocation7 + $0x320] sm:$0xff]  ;;  %v424_v15 = vld [vmem:[#allocation7 + $0x330] sm:$0xff] }
  0xd0   : > { %v438_v14 = vld [vmem:[#allocation7 + $0x3a0] sm:$0xff]  ;;  %v3347_v16 = vpack.c.bf16 %v441_v9, %v425_v8  ;;  %v440_v17 = vld [vmem:[#allocation7 + $0x3b0] sm:$0xff]  ;;  %v455_v18 = vld [vmem:[#allocation7 + $0x428] sm:$0xff] }
  0xd1   : > { %3270 = vmatpush1.bf16.msra.mxu0 %v3269_v36  ;;  %v471_v19 = vld [vmem:[#allocation7 + $0x4a8] sm:$0xff]  ;;  %v457_v20 = vld [vmem:[#allocation7 + $0x438] sm:$0xff]  ;;  %v3317_v22 = vpack.c.bf16 %v438_v14, %v422_v13  ;;  %v3349_v23 = vpack.c.bf16 %v440_v17, %v424_v15  ;;  %v454_v25 = vld [vmem:[#allocation7 + $0x420] sm:$0xff] }
  0xd2   : > { %3302 = vmatpush1.bf16.msra.mxu1 %v3301_v37  ;;  %3304 = vmatprep.subr.bf16.mxu0 %v3303_v38  ;;  %v473_v21 = vld [vmem:[#allocation7 + $0x4b8] sm:$0xff]  ;;  %v3319_v24 = vpack.c.bf16 %v471_v19, %v455_v18  ;;  %v470_v26 = vld [vmem:[#allocation7 + $0x4a0] sm:$0xff]  ;;  %v456_v27 = vld [vmem:[#allocation7 + $0x430] sm:$0xff] }
  0xd3   : > { %3336 = vmatprep.subr.bf16.mxu1 %v3335_v42  ;;  %v3351_v28 = vpack.c.bf16 %v473_v21, %v457_v20  ;;  %v472_v29 = vld [vmem:[#allocation7 + $0x4b0] sm:$0xff]  ;;  %v487_v30 = vld [vmem:[#allocation7 + $0x528] sm:$0xff]  ;;  %v489_v32 = vld [vmem:[#allocation7 + $0x538] sm:$0xff]  ;;  %v3321_v34 = vpack.c.bf16 %v470_v26, %v454_v25 }
  0xd4   : > { %643 = vmatmul.mubr.f32.vlgmr.msra.gmra.mrb[0].mxu0 %v4611_v48  ;;  %v503_v31 = vld [vmem:[#allocation7 + $0x5a8] sm:$0xff]  ;;  %v505_v33 = vld [vmem:[#allocation7 + $0x5b8] sm:$0xff]  ;;  %v3353_v35 = vpack.c.bf16 %v472_v29, %v456_v27  ;;  %v486_v37 = vld [vmem:[#allocation7 + $0x520] sm:$0xff] }
  0xd5   : > { %714 = vmatmul.mubr.f32.vlgmr.msra.gmra.mrb[0].mxu1 %v4611_v48  ;;  %3306 = vmatpush1.bf16.msra.mxu0 %v3305_v49  ;;  %v3323_v36 = vpack.c.bf16 %v503_v31, %v487_v30  ;;  %v502_v38 = vld [vmem:[#allocation7 + $0x5a0] sm:$0xff]  ;;  %v488_v39 = vld [vmem:[#allocation7 + $0x530] sm:$0xff]  ;;  %v3355_v40 = vpack.c.bf16 %v505_v33, %v489_v32  ;;  %v519_v42 = vld [vmem:[#allocation7 + $0x628] sm:$0xff] }
  0xd6   : > { %3338 = vmatpush1.bf16.msra.mxu1 %v3337_v50  ;;  %3308 = vmatprep.subr.bf16.mxu0 %v3307_v51  ;;  %v504_v41 = vld [vmem:[#allocation7 + $0x5b0] sm:$0xff]  ;;  %v535_v43 = vld [vmem:[#allocation7 + $0x6a8] sm:$0xff]  ;;  %v521_v44 = vld [vmem:[#allocation7 + $0x638] sm:$0xff]  ;;  %v3325_v46 = vpack.c.bf16 %v502_v38, %v486_v37 }
  0xd7   : > { %3340 = vmatprep.subr.bf16.mxu1 %v3339_v55  ;;  %784 = vmatprep.mubr.f32.mxu0 %v4325_v0  ;;  %v537_v45 = vld [vmem:[#allocation7 + $0x6b8] sm:$0xff]  ;;  %v3357_v47 = vpack.c.bf16 %v504_v41, %v488_v39  ;;  %v3327_v49 = vpack.c.bf16 %v535_v43, %v519_v42  ;;  %v518_v50 = vld [vmem:[#allocation7 + $0x620] sm:$0xff]  ;;  %v520_v52 = vld [vmem:[#allocation7 + $0x630] sm:$0xff] }
  0xd8   : > { %855 = vmatprep.mubr.f32.mxu1 %v4325_v0  ;;  %v534_v51 = vld [vmem:[#allocation7 + $0x6a0] sm:$0xff]  ;;  %v3359_v53 = vpack.c.bf16 %v537_v45, %v521_v44  ;;  %v536_v54 = vld [vmem:[#allocation7 + $0x6b0] sm:$0xff]  ;;  %v551_v55 = vld [vmem:[#allocation7 + $0x728] sm:$0xff] }
  0xd9   : > { %3310 = vmatpush1.bf16.msra.mxu0 %v3309_v61  ;;  %v567_v56 = vld [vmem:[#allocation7 + $0x7a8] sm:$0xff]  ;;  %v553_v57 = vld [vmem:[#allocation7 + $0x738] sm:$0xff]  ;;  %v3329_v59 = vpack.c.bf16 %v534_v51, %v518_v50  ;;  %v3361_v60 = vpack.c.bf16 %v536_v54, %v520_v52  ;;  %v552_v1 = vld [vmem:[#allocation7 + $0x730] sm:$0xff] }
  0xda   : > { %3342 = vmatpush1.bf16.msra.mxu1 %v3341_v62  ;;  %3312 = vmatprep.subr.bf16.mxu0 %v3311_v63  ;;  %v569_v58 = vld [vmem:[#allocation7 + $0x7b8] sm:$0xff]  ;;  %v3331_v61 = vpack.c.bf16 %v567_v56, %v551_v55  ;;  %v550_v62 = vld [vmem:[#allocation7 + $0x720] sm:$0xff]  ;;  %v568_v3 = vld [vmem:[#allocation7 + $0x7b0] sm:$0xff] }
  0xdb   : > { %3344 = vmatprep.subr.bf16.mxu1 %v3343_v4  ;;  %v566_v63 = vld [vmem:[#allocation7 + $0x7a0] sm:$0xff]  ;;  %v3363_v2 = vpack.c.bf16 %v569_v58, %v553_v57  ;;  %v331_v4 = vld [vmem:[#allocation7 + $0x48] sm:$0xff]  ;;  %v333_v6 = vld [vmem:[#allocation7 + $0x58] sm:$0xff]  ;;  %v3365_v9 = vpack.c.bf16 %v568_v3, %v552_v1 }
  0xdc   : > { %v347_v5 = vld [vmem:[#allocation7 + $0xc8] sm:$0xff]  ;;  %v349_v7 = vld [vmem:[#allocation7 + $0xd8] sm:$0xff]  ;;  %v3333_v8 = vpack.c.bf16 %v566_v63, %v550_v62  ;;  %v332_v13 = vld [vmem:[#allocation7 + $0x50] sm:$0xff] }
  0xdd   : > { %3314 = vmatpush1.bf16.msra.mxu0 %v3313_v10  ;;  %v3367_v10 = vpack.c.bf16 %v347_v5, %v331_v4  ;;  %v3399_v14 = vpack.c.bf16 %v349_v7, %v333_v6  ;;  %v348_v15 = vld [vmem:[#allocation7 + $0xd0] sm:$0xff]  ;;  %v379_v17 = vld [vmem:[#allocation7 + $0x1c8] sm:$0xff]  ;;  %v365_v18 = vld [vmem:[#allocation7 + $0x158] sm:$0xff] }
  0xde   : > { %3346 = vmatpush1.bf16.msra.mxu1 %v3345_v11  ;;  %3316 = vmatprep.subr.bf16.mxu0 %v3315_v12  ;;  %v330_v11 = vld [vmem:[#allocation7 + $0x40] sm:$0xff]  ;;  %v381_v19 = vld [vmem:[#allocation7 + $0x1d8] sm:$0xff]  ;;  %v3401_v21 = vpack.c.bf16 %v348_v15, %v332_v13  ;;  %v364_v25 = vld [vmem:[#allocation7 + $0x150] sm:$0xff] }
  0xdf   : > { %3348 = vmatprep.subr.bf16.mxu1 %v3347_v16  ;;  %v346_v12 = vld [vmem:[#allocation7 + $0xc0] sm:$0xff]  ;;  %v363_v16 = vld [vmem:[#allocation7 + $0x148] sm:$0xff]  ;;  %v3403_v26 = vpack.c.bf16 %v381_v19, %v365_v18  ;;  %v380_v27 = vld [vmem:[#allocation7 + $0x1d0] sm:$0xff] }
  0xe0   : > { %v3369_v20 = vpack.c.bf16 %v346_v12, %v330_v11  ;;  %v411_v29 = vld [vmem:[#allocation7 + $0x2c8] sm:$0xff]  ;;  %v397_v30 = vld [vmem:[#allocation7 + $0x258] sm:$0xff]  ;;  %v3405_v33 = vpack.c.bf16 %v380_v27, %v364_v25  ;;  %v396_v37 = vld [vmem:[#allocation7 + $0x250] sm:$0xff] }
  0xe1   : > { %3318 = vmatpush1.bf16.msra.mxu0 %v3317_v22  ;;  %v3371_v22 = vpack.c.bf16 %v379_v17, %v363_v16  ;;  %v413_v31 = vld [vmem:[#allocation7 + $0x2d8] sm:$0xff]  ;;  %v412_v39 = vld [vmem:[#allocation7 + $0x2d0] sm:$0xff]  ;;  %v443_v41 = vld [vmem:[#allocation7 + $0x3c8] sm:$0xff] }
  0xe2   : > { %3350 = vmatpush1.bf16.msra.mxu1 %v3349_v23  ;;  %3320 = vmatprep.subr.bf16.mxu0 %v3319_v24  ;;  %v362_v23 = vld [vmem:[#allocation7 + $0x140] sm:$0xff]  ;;  %v3407_v38 = vpack.c.bf16 %v413_v31, %v397_v30  ;;  %v429_v42 = vld [vmem:[#allocation7 + $0x358] sm:$0xff]  ;;  %v3409_v45 = vpack.c.bf16 %v412_v39, %v396_v37  ;;  %v428_v50 = vld [vmem:[#allocation7 + $0x350] sm:$0xff] }
  0xe3   : > { %3352 = vmatprep.subr.bf16.mxu1 %v3351_v28  ;;  %v378_v24 = vld [vmem:[#allocation7 + $0x1c0] sm:$0xff]  ;;  %v395_v28 = vld [vmem:[#allocation7 + $0x248] sm:$0xff]  ;;  %v445_v43 = vld [vmem:[#allocation7 + $0x3d8] sm:$0xff] }
  0xe4   : > { %v3373_v32 = vpack.c.bf16 %v378_v24, %v362_v23  ;;  %v3411_v51 = vpack.c.bf16 %v445_v43, %v429_v42  ;;  %v444_v52 = vld [vmem:[#allocation7 + $0x3d0] sm:$0xff]  ;;  %v475_v54 = vld [vmem:[#allocation7 + $0x4c8] sm:$0xff]  ;;  %v461_v55 = vld [vmem:[#allocation7 + $0x458] sm:$0xff] }
  0xe5   : > { %3322 = vmatpush1.bf16.msra.mxu0 %v3321_v34  ;;  %v3375_v34 = vpack.c.bf16 %v411_v29, %v395_v28  ;;  %v477_v56 = vld [vmem:[#allocation7 + $0x4d8] sm:$0xff]  ;;  %v3413_v58 = vpack.c.bf16 %v444_v52, %v428_v50  ;;  %v460_v62 = vld [vmem:[#allocation7 + $0x450] sm:$0xff]  ;;  %v507_v3 = vld [vmem:[#allocation7 + $0x5c8] sm:$0xff] }
  0xe6   : > { %3354 = vmatpush1.bf16.msra.mxu1 %v3353_v35  ;;  %3324 = vmatprep.subr.bf16.mxu0 %v3323_v36  ;;  %v394_v35 = vld [vmem:[#allocation7 + $0x240] sm:$0xff]  ;;  %v3415_v63 = vpack.c.bf16 %v477_v56, %v461_v55  ;;  %v476_v1 = vld [vmem:[#allocation7 + $0x4d0] sm:$0xff]  ;;  %v493_v4 = vld [vmem:[#allocation7 + $0x558] sm:$0xff] }
  0xe7   : > { %3356 = vmatprep.subr.bf16.mxu1 %v3355_v40  ;;  %v410_v36 = vld [vmem:[#allocation7 + $0x2c0] sm:$0xff]  ;;  %v427_v40 = vld [vmem:[#allocation7 + $0x348] sm:$0xff]  ;;  %v509_v5 = vld [vmem:[#allocation7 + $0x5d8] sm:$0xff]  ;;  %v3417_v7 = vpack.c.bf16 %v476_v1, %v460_v62 }
  0xe8   : > { %v3377_v44 = vpack.c.bf16 %v410_v36, %v394_v35  ;;  %v492_v11 = vld [vmem:[#allocation7 + $0x550] sm:$0xff]  ;;  %v3419_v12 = vpack.c.bf16 %v509_v5, %v493_v4  ;;  %v539_v15 = vld [vmem:[#allocation7 + $0x6c8] sm:$0xff]  ;;  %v525_v16 = vld [vmem:[#allocation7 + $0x658] sm:$0xff] }
  0xe9   : > { %3326 = vmatpush1.bf16.msra.mxu0 %v3325_v46  ;;  %v3379_v46 = vpack.c.bf16 %v443_v41, %v427_v40  ;;  %v508_v13 = vld [vmem:[#allocation7 + $0x5d0] sm:$0xff]  ;;  %v541_v17 = vld [vmem:[#allocation7 + $0x6d8] sm:$0xff]  ;;  %v571_v27 = vld [vmem:[#allocation7 + $0x7c8] sm:$0xff] }
  0xea   : > { %3358 = vmatpush1.bf16.msra.mxu1 %v3357_v47  ;;  %3328 = vmatprep.subr.bf16.mxu0 %v3327_v49  ;;  %v426_v47 = vld [vmem:[#allocation7 + $0x340] sm:$0xff]  ;;  %v3421_v19 = vpack.c.bf16 %v508_v13, %v492_v11  ;;  %v524_v23 = vld [vmem:[#allocation7 + $0x650] sm:$0xff]  ;;  %v3423_v24 = vpack.c.bf16 %v541_v17, %v525_v16  ;;  %v557_v28 = vld [vmem:[#allocation7 + $0x758] sm:$0xff] }
  0xeb   : > { %3360 = vmatprep.subr.bf16.mxu1 %v3359_v53  ;;  %v442_v49 = vld [vmem:[#allocation7 + $0x3c0] sm:$0xff]  ;;  %v459_v53 = vld [vmem:[#allocation7 + $0x448] sm:$0xff]  ;;  %v540_v25 = vld [vmem:[#allocation7 + $0x6d0] sm:$0xff] }
  0xec   : > { %v3381_v57 = vpack.c.bf16 %v442_v49, %v426_v47  ;;  %v573_v29 = vld [vmem:[#allocation7 + $0x7d8] sm:$0xff]  ;;  %v3425_v31 = vpack.c.bf16 %v540_v25, %v524_v23  ;;  %v556_v35 = vld [vmem:[#allocation7 + $0x750] sm:$0xff]  ;;  %v351_v39 = vld [vmem:[#allocation7 + $0xe8] sm:$0xff] }
  0xed   : > { %3330 = vmatpush1.bf16.msra.mxu0 %v3329_v59  ;;  %v3383_v59 = vpack.c.bf16 %v475_v54, %v459_v53  ;;  %v3427_v36 = vpack.c.bf16 %v573_v29, %v557_v28  ;;  %v572_v37 = vld [vmem:[#allocation7 + $0x7d0] sm:$0xff]  ;;  %v337_v40 = vld [vmem:[#allocation7 + $0x78] sm:$0xff]  ;;  %v383_v52 = vld [vmem:[#allocation7 + $0x1e8] sm:$0xff] }
  0xee   : > { %3362 = vmatpush1.bf16.msra.mxu1 %v3361_v60  ;;  %3332 = vmatprep.subr.bf16.mxu0 %v3331_v61  ;;  %v458_v60 = vld [vmem:[#allocation7 + $0x440] sm:$0xff]  ;;  %v353_v41 = vld [vmem:[#allocation7 + $0xf8] sm:$0xff]  ;;  %v3429_v43 = vpack.c.bf16 %v572_v37, %v556_v35  ;;  %v336_v47 = vld [vmem:[#allocation7 + $0x70] sm:$0xff] }
  0xef   : > { %3364 = vmatprep.subr.bf16.mxu1 %v3363_v2  ;;  %v474_v61 = vld [vmem:[#allocation7 + $0x4c0] sm:$0xff]  ;;  %v491_v2 = vld [vmem:[#allocation7 + $0x548] sm:$0xff]  ;;  %v3463_v49 = vpack.c.bf16 %v353_v41, %v337_v40  ;;  %v352_v50 = vld [vmem:[#allocation7 + $0xf0] sm:$0xff] }
  0xf0   : > { %v3385_v6 = vpack.c.bf16 %v474_v61, %v458_v60  ;;  %v369_v53 = vld [vmem:[#allocation7 + $0x178] sm:$0xff]  ;;  %v3465_v56 = vpack.c.bf16 %v352_v50, %v336_v47  ;;  %v368_v60 = vld [vmem:[#allocation7 + $0x170] sm:$0xff]  ;;  %v415_v1 = vld [vmem:[#allocation7 + $0x2e8] sm:$0xff] }
  0xf1   : > { %3334 = vmatpush1.bf16.msra.mxu0 %v3333_v8  ;;  %v3387_v8 = vpack.c.bf16 %v507_v3, %v491_v2  ;;  %v385_v54 = vld [vmem:[#allocation7 + $0x1f8] sm:$0xff]  ;;  %v384_v62 = vld [vmem:[#allocation7 + $0x1f0] sm:$0xff]  ;;  %v447_v13 = vld [vmem:[#allocation7 + $0x3e8] sm:$0xff] }
  0xf2   : > { %3366 = vmatpush1.bf16.msra.mxu1 %v3365_v9  ;;  %3368 = vmatprep.subr.bf16.mxu0 %v3367_v10  ;;  %v490_v9 = vld [vmem:[#allocation7 + $0x540] sm:$0xff]  ;;  %v3467_v61 = vpack.c.bf16 %v385_v54, %v369_v53  ;;  %v401_v2 = vld [vmem:[#allocation7 + $0x278] sm:$0xff]  ;;  %v3469_v5 = vpack.c.bf16 %v384_v62, %v368_v60  ;;  %v416_v11 = vld [vmem:[#allocation7 + $0x2f0] sm:$0xff] }
  0xf3   : > { %3400 = vmatprep.subr.bf16.mxu1 %v3399_v14  ;;  %v506_v10 = vld [vmem:[#allocation7 + $0x5c0] sm:$0xff]  ;;  %v523_v14 = vld [vmem:[#allocation7 + $0x648] sm:$0xff]  ;;  %v417_v3 = vld [vmem:[#allocation7 + $0x2f8] sm:$0xff] }
  0xf4   : > { %785 = vmatmul.mubr.f32.vlgmr.msra.gmra.mrb[2].mxu0 %v4611_v48  ;;  %v3389_v18 = vpack.c.bf16 %v506_v10, %v490_v9  ;;  %v400_v9 = vld [vmem:[#allocation7 + $0x270] sm:$0xff]  ;;  %v3471_v10 = vpack.c.bf16 %v417_v3, %v401_v2  ;;  %v479_v25 = vld [vmem:[#allocation7 + $0x4e8] sm:$0xff] }
  0xf5   : > { %856 = vmatmul.mubr.f32.vlgmr.msra.gmra.mrb[2].mxu1 %v4611_v48  ;;  %3370 = vmatpush1.bf16.msra.mxu0 %v3369_v20  ;;  %v3391_v20 = vpack.c.bf16 %v539_v15, %v523_v14  ;;  %v433_v14 = vld [vmem:[#allocation7 + $0x378] sm:$0xff]  ;;  %v3473_v17 = vpack.c.bf16 %v416_v11, %v400_v9  ;;  %v448_v23 = vld [vmem:[#allocation7 + $0x3f0] sm:$0xff]  ;;  %v511_v37 = vld [vmem:[#allocation7 + $0x5e8] sm:$0xff] }
  0xf6   : > { %3402 = vmatpush1.bf16.msra.mxu1 %v3401_v21  ;;  %3372 = vmatprep.subr.bf16.mxu0 %v3371_v22  ;;  %v522_v21 = vld [vmem:[#allocation7 + $0x640] sm:$0xff]  ;;  %v449_v15 = vld [vmem:[#allocation7 + $0x3f8] sm:$0xff]  ;;  %v480_v35 = vld [vmem:[#allocation7 + $0x4f0] sm:$0xff] }
  0xf7   : > { %3404 = vmatprep.subr.bf16.mxu1 %v3403_v26  ;;  %926 = vmatprep.mubr.f32.mxu0 %v4325_v0  ;;  %v538_v22 = vld [vmem:[#allocation7 + $0x6c0] sm:$0xff]  ;;  %v555_v26 = vld [vmem:[#allocation7 + $0x748] sm:$0xff]  ;;  %v512_v47 = vld [vmem:[#allocation7 + $0x5f0] sm:$0xff] }
  0xf8   : > { %997 = vmatprep.mubr.f32.mxu1 %v4325_v0  ;;  %v3393_v30 = vpack.c.bf16 %v538_v22, %v522_v21  ;;  %v432_v21 = vld [vmem:[#allocation7 + $0x370] sm:$0xff]  ;;  %v3475_v22 = vpack.c.bf16 %v449_v15, %v433_v14  ;;  %v543_v50 = vld [vmem:[#allocation7 + $0x6e8] sm:$0xff] }
  0xf9   : > { %3374 = vmatpush1.bf16.msra.mxu0 %v3373_v32  ;;  %v3395_v32 = vpack.c.bf16 %v571_v27, %v555_v26  ;;  %v465_v26 = vld [vmem:[#allocation7 + $0x478] sm:$0xff]  ;;  %v3477_v29 = vpack.c.bf16 %v448_v23, %v432_v21  ;;  %v544_v60 = vld [vmem:[#allocation7 + $0x6f0] sm:$0xff]  ;;  %v575_v62 = vld [vmem:[#allocation7 + $0x7e8] sm:$0xff] }
  0xfa   : > { %3406 = vmatpush1.bf16.msra.mxu1 %v3405_v33  ;;  %3376 = vmatprep.subr.bf16.mxu0 %v3375_v34  ;;  %v554_v33 = vld [vmem:[#allocation7 + $0x740] sm:$0xff]  ;;  %v481_v27 = vld [vmem:[#allocation7 + $0x4f8] sm:$0xff]  ;;  %v576_v9 = vld [vmem:[#allocation7 + $0x7f0] sm:$0xff] }
  0xfb   : > { %3408 = vmatprep.subr.bf16.mxu1 %v3407_v38  ;;  %v570_v34 = vld [vmem:[#allocation7 + $0x7c0] sm:$0xff]  ;;  %v335_v38 = vld [vmem:[#allocation7 + $0x68] sm:$0xff]  ;;  %v1164_v21 = vld [vmem:[#allocation8 + $0x90] sm:$0xff] }
  0xfc   : > { %v3397_v42 = vpack.c.bf16 %v570_v34, %v554_v33  ;;  %v464_v33 = vld [vmem:[#allocation7 + $0x470] sm:$0xff]  ;;  %v3479_v34 = vpack.c.bf16 %v481_v27, %v465_v26  ;;  %v1163_v11 = vld [vmem:[#allocation8 + $0x88] sm:$0xff] }
  0xfd   : > { %3378 = vmatpush1.bf16.msra.mxu0 %v3377_v44  ;;  %v3431_v44 = vpack.c.bf16 %v351_v39, %v335_v38  ;;  %v497_v38 = vld [vmem:[#allocation7 + $0x578] sm:$0xff]  ;;  %v3481_v41 = vpack.c.bf16 %v480_v35, %v464_v33  ;;  %v1195_v23 = vld [vmem:[#allocation8 + $0x188] sm:$0xff]  ;;  %v1196_v33 = vld [vmem:[#allocation8 + $0x190] sm:$0xff] }
  0xfe   : > { %3410 = vmatpush1.bf16.msra.mxu1 %v3409_v45  ;;  %3380 = vmatprep.subr.bf16.mxu0 %v3379_v46  ;;  %v334_v45 = vld [vmem:[#allocation7 + $0x60] sm:$0xff]  ;;  %v513_v39 = vld [vmem:[#allocation7 + $0x5f8] sm:$0xff]  ;;  %v1227_v35 = vld [vmem:[#allocation8 + $0x288] sm:$0xff] }
  0xff   : > { %3412 = vmatprep.subr.bf16.mxu1 %v3411_v51  ;;  %v350_v46 = vld [vmem:[#allocation7 + $0xe0] sm:$0xff]  ;;  %v367_v51 = vld [vmem:[#allocation7 + $0x168] sm:$0xff] }
 0x100   : > { %v3433_v55 = vpack.c.bf16 %v350_v46, %v334_v45  ;;  %v496_v45 = vld [vmem:[#allocation7 + $0x570] sm:$0xff]  ;;  %v3483_v46 = vpack.c.bf16 %v513_v39, %v497_v38 }
 0x101   : > { %3382 = vmatpush1.bf16.msra.mxu0 %v3381_v57  ;;  %v3435_v57 = vpack.c.bf16 %v383_v52, %v367_v51  ;;  %v529_v51 = vld [vmem:[#allocation7 + $0x678] sm:$0xff]  ;;  %v3485_v54 = vpack.c.bf16 %v512_v47, %v496_v45  ;;  %v1228_v45 = vld [vmem:[#allocation8 + $0x290] sm:$0xff]  ;;  %v1259_v47 = vld [vmem:[#allocation8 + $0x388] sm:$0xff] }
 0x102   : > { %3414 = vmatpush1.bf16.msra.mxu1 %v3413_v58  ;;  %3384 = vmatprep.subr.bf16.mxu0 %v3383_v59  ;;  %v366_v58 = vld [vmem:[#allocation7 + $0x160] sm:$0xff]  ;;  %v545_v52 = vld [vmem:[#allocation7 + $0x6f8] sm:$0xff] }
 0x103   : > { %3416 = vmatprep.subr.bf16.mxu1 %v3415_v63  ;;  %v382_v59 = vld [vmem:[#allocation7 + $0x1e0] sm:$0xff]  ;;  %v399_v63 = vld [vmem:[#allocation7 + $0x268] sm:$0xff] }
 0x104   : > { %v3437_v4 = vpack.c.bf16 %v382_v59, %v366_v58  ;;  %v528_v58 = vld [vmem:[#allocation7 + $0x670] sm:$0xff]  ;;  %v3487_v59 = vpack.c.bf16 %v545_v52, %v529_v51 }
 0x105   : > { %3386 = vmatpush1.bf16.msra.mxu0 %v3385_v6  ;;  %v3439_v6 = vpack.c.bf16 %v415_v1, %v399_v63  ;;  %v561_v63 = vld [vmem:[#allocation7 + $0x778] sm:$0xff]  ;;  %v3489_v3 = vpack.c.bf16 %v544_v60, %v528_v58  ;;  %v1275_v58 = vld [vmem:[#allocation8 + $0x408] sm:$0xff] }
 0x106   : > { %3418 = vmatpush1.bf16.msra.mxu1 %v3417_v7  ;;  %3388 = vmatprep.subr.bf16.mxu0 %v3387_v8  ;;  %v398_v7 = vld [vmem:[#allocation7 + $0x260] sm:$0xff]  ;;  %v577_v1 = vld [vmem:[#allocation7 + $0x7f8] sm:$0xff] }
 0x107   : > { %3420 = vmatprep.subr.bf16.mxu1 %v3419_v12  ;;  %v414_v8 = vld [vmem:[#allocation7 + $0x2e0] sm:$0xff]  ;;  %v431_v12 = vld [vmem:[#allocation7 + $0x368] sm:$0xff]  ;;  %v1277_v60 = vld [vmem:[#allocation8 + $0x418] sm:$0xff] }
 0x108   : > { %v3441_v16 = vpack.c.bf16 %v414_v8, %v398_v7  ;;  %v560_v7 = vld [vmem:[#allocation7 + $0x770] sm:$0xff]  ;;  %v3491_v8 = vpack.c.bf16 %v577_v1, %v561_v63 }
 0x109   : > { %3390 = vmatpush1.bf16.msra.mxu0 %v3389_v18  ;;  %v3443_v18 = vpack.c.bf16 %v447_v13, %v431_v12  ;;  %v1149_v12 = vld [vmem:[#allocation8 + $0x18] sm:$0xff]  ;;  %v3493_v15 = vpack.c.bf16 %v576_v9, %v560_v7  ;;  %v1307_v7 = vld [vmem:[#allocation8 + $0x508] sm:$0xff] }
 0x10a   : > { %3422 = vmatpush1.bf16.msra.mxu1 %v3421_v19  ;;  %3392 = vmatprep.subr.bf16.mxu0 %v3391_v20  ;;  %v430_v19 = vld [vmem:[#allocation7 + $0x360] sm:$0xff]  ;;  %v1165_v13 = vld [vmem:[#allocation8 + $0x98] sm:$0xff] }
 0x10b   : > { %3424 = vmatprep.subr.bf16.mxu1 %v3423_v24  ;;  %v446_v20 = vld [vmem:[#allocation7 + $0x3e0] sm:$0xff]  ;;  %v463_v24 = vld [vmem:[#allocation7 + $0x468] sm:$0xff]  ;;  %v1309_v9 = vld [vmem:[#allocation8 + $0x518] sm:$0xff] }
 0x10c   : > { %v3445_v28 = vpack.c.bf16 %v446_v20, %v430_v19  ;;  %v1148_v19 = vld [vmem:[#allocation8 + $0x10] sm:$0xff]  ;;  %v3527_v20 = vpack.c.bf16 %v1165_v13, %v1149_v12 }
 0x10d   : > { %3394 = vmatpush1.bf16.msra.mxu0 %v3393_v30  ;;  %v3447_v30 = vpack.c.bf16 %v479_v25, %v463_v24  ;;  %v1181_v24 = vld [vmem:[#allocation8 + $0x118] sm:$0xff]  ;;  %v3529_v27 = vpack.c.bf16 %v1164_v21, %v1148_v19  ;;  %v1339_v19 = vld [vmem:[#allocation8 + $0x608] sm:$0xff] }
 0x10e   : > { %3426 = vmatpush1.bf16.msra.mxu1 %v3425_v31  ;;  %3396 = vmatprep.subr.bf16.mxu0 %v3395_v32  ;;  %v462_v31 = vld [vmem:[#allocation7 + $0x460] sm:$0xff]  ;;  %v1197_v25 = vld [vmem:[#allocation8 + $0x198] sm:$0xff] }
 0x10f   : > { %3428 = vmatprep.subr.bf16.mxu1 %v3427_v36  ;;  %v478_v32 = vld [vmem:[#allocation7 + $0x4e0] sm:$0xff]  ;;  %v495_v36 = vld [vmem:[#allocation7 + $0x568] sm:$0xff]  ;;  %v1341_v21 = vld [vmem:[#allocation8 + $0x618] sm:$0xff] }
 0x110   : > { %v3449_v40 = vpack.c.bf16 %v478_v32, %v462_v31  ;;  %v1180_v31 = vld [vmem:[#allocation8 + $0x110] sm:$0xff]  ;;  %v3531_v32 = vpack.c.bf16 %v1197_v25, %v1181_v24 }
 0x111   : > { %3398 = vmatpush1.bf16.msra.mxu0 %v3397_v42  ;;  %v3451_v42 = vpack.c.bf16 %v511_v37, %v495_v36  ;;  %v1213_v36 = vld [vmem:[#allocation8 + $0x218] sm:$0xff]  ;;  %v3533_v39 = vpack.c.bf16 %v1196_v33, %v1180_v31  ;;  %v1371_v31 = vld [vmem:[#allocation8 + $0x708] sm:$0xff] }
 0x112   : > { %3430 = vmatpush1.bf16.msra.mxu1 %v3429_v43  ;;  %3432 = vmatprep.subr.bf16.mxu0 %v3431_v44  ;;  %v494_v43 = vld [vmem:[#allocation7 + $0x560] sm:$0xff]  ;;  %v1229_v37 = vld [vmem:[#allocation8 + $0x298] sm:$0xff] }
 0x113   : > { %3464 = vmatprep.subr.bf16.mxu1 %v3463_v49  ;;  %v510_v44 = vld [vmem:[#allocation7 + $0x5e0] sm:$0xff]  ;;  %v527_v49 = vld [vmem:[#allocation7 + $0x668] sm:$0xff]  ;;  %v1373_v33 = vld [vmem:[#allocation8 + $0x718] sm:$0xff] }
 0x114   : > { %927 = vmatmul.mubr.f32.vlgmr.msra.gmra.mrb[4].mxu0 %v4611_v48  ;;  %v3453_v53 = vpack.c.bf16 %v510_v44, %v494_v43  ;;  %v1212_v43 = vld [vmem:[#allocation8 + $0x210] sm:$0xff]  ;;  %v3535_v44 = vpack.c.bf16 %v1229_v37, %v1213_v36 }
 0x115   : > { %998 = vmatmul.mubr.f32.vlgmr.msra.gmra.mrb[4].mxu1 %v4611_v48  ;;  %3434 = vmatpush1.bf16.msra.mxu0 %v3433_v55  ;;  %v3455_v55 = vpack.c.bf16 %v543_v50, %v527_v49  ;;  %v1245_v49 = vld [vmem:[#allocation8 + $0x318] sm:$0xff]  ;;  %v3537_v51 = vpack.c.bf16 %v1228_v45, %v1212_v43  ;;  %v1151_v43 = vld [vmem:[#allocation8 + $0x28] sm:$0xff] }
 0x116   : > { %3466 = vmatpush1.bf16.msra.mxu1 %v3465_v56  ;;  %3436 = vmatprep.subr.bf16.mxu0 %v3435_v57  ;;  %v526_v56 = vld [vmem:[#allocation7 + $0x660] sm:$0xff]  ;;  %v1261_v50 = vld [vmem:[#allocation8 + $0x398] sm:$0xff] }
 0x117   : > { %3468 = vmatprep.subr.bf16.mxu1 %v3467_v61  ;;  %1068 = vmatprep.mubr.f32.mxu0 %v4325_v0  ;;  %v542_v57 = vld [vmem:[#allocation7 + $0x6e0] sm:$0xff]  ;;  %v559_v61 = vld [vmem:[#allocation7 + $0x768] sm:$0xff]  ;;  %v1153_v45 = vld [vmem:[#allocation8 + $0x38] sm:$0xff] }
 0x118   : > { %1139 = vmatprep.mubr.f32.mxu1 %v4325_v0  ;;  %v3457_v2 = vpack.c.bf16 %v542_v57, %v526_v56  ;;  %v3539_v56 = vpack.c.bf16 %v1261_v50, %v1245_v49  ;;  %v1260_v57 = vld [vmem:[#allocation8 + $0x390] sm:$0xff] }
 0x119   : > { %3438 = vmatpush1.bf16.msra.mxu0 %v3437_v4  ;;  %v3459_v4 = vpack.c.bf16 %v575_v62, %v559_v61  ;;  %v1293_v61 = vld [vmem:[#allocation8 + $0x498] sm:$0xff] }
 0x11a   : > { %3470 = vmatpush1.bf16.msra.mxu1 %v3469_v5  ;;  %3440 = vmatprep.subr.bf16.mxu0 %v3439_v6  ;;  %v558_v5 = vld [vmem:[#allocation7 + $0x760] sm:$0xff] }
 0x11b   : > { %3472 = vmatprep.subr.bf16.mxu1 %v3471_v10  ;;  %v574_v6 = vld [vmem:[#allocation7 + $0x7e0] sm:$0xff]  ;;  %v1147_v10 = vld [vmem:[#allocation8 + $0x8] sm:$0xff] }
 0x11c   : > { %v3461_v14 = vpack.c.bf16 %v574_v6, %v558_v5  ;;  %v3543_v5 = vpack.c.bf16 %v1293_v61, %v1277_v60  ;;  %v1292_v6 = vld [vmem:[#allocation8 + $0x490] sm:$0xff] }
 0x11d   : > { %3442 = vmatpush1.bf16.msra.mxu0 %v3441_v16  ;;  %v3495_v16 = vpack.c.bf16 %v1163_v11, %v1147_v10  ;;  %v1325_v10 = vld [vmem:[#allocation8 + $0x598] sm:$0xff] }
 0x11e   : > { %3474 = vmatpush1.bf16.msra.mxu1 %v3473_v17  ;;  %3444 = vmatprep.subr.bf16.mxu0 %v3443_v18  ;;  %v1146_v17 = vld [vmem:[#allocation8] sm:$0xff] }
 0x11f   : > { %3476 = vmatprep.subr.bf16.mxu1 %v3475_v22  ;;  %v1162_v18 = vld [vmem:[#allocation8 + $0x80] sm:$0xff]  ;;  %v1179_v22 = vld [vmem:[#allocation8 + $0x108] sm:$0xff] }
 0x120   : > { %v3497_v26 = vpack.c.bf16 %v1162_v18, %v1146_v17  ;;  %v3547_v17 = vpack.c.bf16 %v1325_v10, %v1309_v9  ;;  %v1324_v18 = vld [vmem:[#allocation8 + $0x590] sm:$0xff] }
 0x121   : > { %3446 = vmatpush1.bf16.msra.mxu0 %v3445_v28  ;;  %v3499_v28 = vpack.c.bf16 %v1195_v23, %v1179_v22  ;;  %v1357_v22 = vld [vmem:[#allocation8 + $0x698] sm:$0xff] }
 0x122   : > { %3478 = vmatpush1.bf16.msra.mxu1 %v3477_v29  ;;  %3448 = vmatprep.subr.bf16.mxu0 %v3447_v30  ;;  %v1178_v29 = vld [vmem:[#allocation8 + $0x100] sm:$0xff] }
 0x123   : > { %3480 = vmatprep.subr.bf16.mxu1 %v3479_v34  ;;  %v1194_v30 = vld [vmem:[#allocation8 + $0x180] sm:$0xff]  ;;  %v1211_v34 = vld [vmem:[#allocation8 + $0x208] sm:$0xff] }
 0x124   : > { %v3501_v38 = vpack.c.bf16 %v1194_v30, %v1178_v29  ;;  %v3551_v29 = vpack.c.bf16 %v1357_v22, %v1341_v21  ;;  %v1356_v30 = vld [vmem:[#allocation8 + $0x690] sm:$0xff] }
 0x125   : > { %3450 = vmatpush1.bf16.msra.mxu0 %v3449_v40  ;;  %v3503_v40 = vpack.c.bf16 %v1227_v35, %v1211_v34  ;;  %v1389_v34 = vld [vmem:[#allocation8 + $0x798] sm:$0xff] }
 0x126   : > { %3482 = vmatpush1.bf16.msra.mxu1 %v3481_v41  ;;  %3452 = vmatprep.subr.bf16.mxu0 %v3451_v42  ;;  %v1210_v41 = vld [vmem:[#allocation8 + $0x200] sm:$0xff] }
 0x127   : > { %3484 = vmatprep.subr.bf16.mxu1 %v3483_v46  ;;  %v1226_v42 = vld [vmem:[#allocation8 + $0x280] sm:$0xff]  ;;  %v1243_v46 = vld [vmem:[#allocation8 + $0x308] sm:$0xff] }
 0x128   : > { %v3507_v52 = vpack.c.bf16 %v1259_v47, %v1243_v46  ;;  %v1169_v46 = vld [vmem:[#allocation8 + $0xb8] sm:$0xff] }
 0x129   : > { %3454 = vmatpush1.bf16.msra.mxu0 %v3453_v53  ;;  %v1242_v53 = vld [vmem:[#allocation8 + $0x300] sm:$0xff] }
 0x12a   : > { %3486 = vmatpush1.bf16.msra.mxu1 %v3485_v54  ;;  %3456 = vmatprep.subr.bf16.mxu0 %v3455_v55  ;;  %v1258_v54 = vld [vmem:[#allocation8 + $0x380] sm:$0xff]  ;;  %v1244_v55 = vld [vmem:[#allocation8 + $0x310] sm:$0xff] }
 0x12b   : > { %3488 = vmatprep.subr.bf16.mxu1 %v3487_v59  ;;  %v1291_v59 = vld [vmem:[#allocation8 + $0x488] sm:$0xff]  ;;  %v3509_v62 = vpack.c.bf16 %v1258_v54, %v1242_v53  ;;  %v3541_v63 = vpack.c.bf16 %v1260_v57, %v1244_v55  ;;  %v3591_v53 = vpack.c.bf16 %v1169_v46, %v1153_v45  ;;  %v1168_v54 = vld [vmem:[#allocation8 + $0xb0] sm:$0xff]  ;;  %v1185_v57 = vld [vmem:[#allocation8 + $0x138] sm:$0xff] }
 0x12c   : > { %v3511_v1 = vpack.c.bf16 %v1291_v59, %v1275_v58  ;;  %v1183_v55 = vld [vmem:[#allocation8 + $0x128] sm:$0xff]  ;;  %v1201_v58 = vld [vmem:[#allocation8 + $0x1b8] sm:$0xff] }
 0x12d   : > { %3458 = vmatpush1.bf16.msra.mxu0 %v3457_v2  ;;  %v1274_v2 = vld [vmem:[#allocation8 + $0x400] sm:$0xff]  ;;  %v4631_v59 = vld [vmem:[%s276_s28] sm:$0xff] }
 0x12e   : > { %3490 = vmatpush1.bf16.msra.mxu1 %v3489_v3  ;;  %3460 = vmatprep.subr.bf16.mxu0 %v3459_v4  ;;  %v1290_v3 = vld [vmem:[#allocation8 + $0x480] sm:$0xff]  ;;  %v1276_v4 = vld [vmem:[#allocation8 + $0x410] sm:$0xff] }
 0x12f   : > { %3492 = vmatprep.subr.bf16.mxu1 %v3491_v8  ;;  %v1323_v8 = vld [vmem:[#allocation8 + $0x588] sm:$0xff]  ;;  %v3513_v11 = vpack.c.bf16 %v1290_v3, %v1274_v2  ;;  %v3545_v12 = vpack.c.bf16 %v1292_v6, %v1276_v4  ;;  %v1184_v2 = vld [vmem:[#allocation8 + $0x130] sm:$0xff]  ;;  %v3595_v3 = vpack.c.bf16 %v1201_v58, %v1185_v57 }
 0x130   : > { %v3515_v13 = vpack.c.bf16 %v1323_v8, %v1307_v7  ;;  %v1200_v4 = vld [vmem:[#allocation8 + $0x1b0] sm:$0xff]  ;;  %v1231_v6 = vld [vmem:[#allocation8 + $0x2a8] sm:$0xff]  ;;  %v1217_v7 = vld [vmem:[#allocation8 + $0x238] sm:$0xff] }
 0x131   : > { %3462 = vmatpush1.bf16.msra.mxu0 %v3461_v14  ;;  %v1306_v14 = vld [vmem:[#allocation8 + $0x500] sm:$0xff]  ;;  %v1233_v8 = vld [vmem:[#allocation8 + $0x2b8] sm:$0xff]  ;;  %v3597_v10 = vpack.c.bf16 %v1200_v4, %v1184_v2  ;;  %v1360_v2 = vld [vmem:[#allocation8 + $0x6b0] sm:$0xff] }
 0x132   : > { %3494 = vmatpush1.bf16.msra.mxu1 %v3493_v15  ;;  %3496 = vmatprep.subr.bf16.mxu0 %v3495_v16  ;;  %v1322_v15 = vld [vmem:[#allocation8 + $0x580] sm:$0xff]  ;;  %v1308_v16 = vld [vmem:[#allocation8 + $0x510] sm:$0xff]  ;;  %v1391_v4 = vld [vmem:[#allocation8 + $0x7a8] sm:$0xff] }
 0x133   : > { %3528 = vmatprep.subr.bf16.mxu1 %v3527_v20  ;;  %v1355_v20 = vld [vmem:[#allocation8 + $0x688] sm:$0xff]  ;;  %v3517_v23 = vpack.c.bf16 %v1322_v15, %v1306_v14  ;;  %v3549_v24 = vpack.c.bf16 %v1324_v18, %v1308_v16  ;;  %v1216_v14 = vld [vmem:[#allocation8 + $0x230] sm:$0xff]  ;;  %v3599_v15 = vpack.c.bf16 %v1233_v8, %v1217_v7 }
 0x134   : > { %1069 = vmatmul.mubr.f32.vlgmr.msra.gmra.mrb[6].mxu0 %v4611_v48  ;;  %v3519_v25 = vpack.c.bf16 %v1355_v20, %v1339_v19  ;;  %v1232_v16 = vld [vmem:[#allocation8 + $0x2b0] sm:$0xff]  ;;  %v1263_v18 = vld [vmem:[#allocation8 + $0x3a8] sm:$0xff]  ;;  %v1249_v19 = vld [vmem:[#allocation8 + $0x338] sm:$0xff] }
 0x135   : > { %1140 = vmatmul.mubr.f32.vlgmr.msra.gmra.mrb[6].mxu1 %v4611_v48  ;;  %3498 = vmatpush1.bf16.msra.mxu0 %v3497_v26  ;;  %v3505_v48 = vpack.c.bf16 %v1226_v42, %v1210_v41  ;;  %v1338_v26 = vld [vmem:[#allocation8 + $0x600] sm:$0xff]  ;;  %v3555_v41 = vpack.c.bf16 %v1389_v34, %v1373_v33  ;;  %v1388_v42 = vld [vmem:[#allocation8 + $0x790] sm:$0xff]  ;;  %v1265_v20 = vld [vmem:[#allocation8 + $0x3b8] sm:$0xff]  ;;  %v3601_v22 = vpack.c.bf16 %v1232_v16, %v1216_v14 }
 0x136   : > { %3530 = vmatpush1.bf16.msra.mxu1 %v3529_v27  ;;  %3500 = vmatprep.subr.bf16.mxu0 %v3499_v28  ;;  %v1354_v27 = vld [vmem:[#allocation8 + $0x680] sm:$0xff]  ;;  %v1340_v28 = vld [vmem:[#allocation8 + $0x610] sm:$0xff]  ;;  %v1171_v16 = vld [vmem:[#allocation8 + $0xc8] sm:$0xff] }
 0x137   : > { %3532 = vmatprep.subr.bf16.mxu1 %v3531_v32  ;;  %1466 = vmatprep.mubr.f32.mxu0 %v4325_v0  ;;  %v1387_v32 = vld [vmem:[#allocation8 + $0x788] sm:$0xff]  ;;  %v3521_v35 = vpack.c.bf16 %v1354_v27, %v1338_v26  ;;  %v3553_v36 = vpack.c.bf16 %v1356_v30, %v1340_v28  ;;  %v1248_v26 = vld [vmem:[#allocation8 + $0x330] sm:$0xff]  ;;  %v3603_v27 = vpack.c.bf16 %v1265_v20, %v1249_v19 }
 0x138   : > { %1537 = vmatprep.mubr.f32.mxu1 %v4325_v0  ;;  %v3523_v37 = vpack.c.bf16 %v1387_v32, %v1371_v31  ;;  %v1264_v28 = vld [vmem:[#allocation8 + $0x3b0] sm:$0xff]  ;;  %v1295_v30 = vld [vmem:[#allocation8 + $0x4a8] sm:$0xff]  ;;  %v1281_v31 = vld [vmem:[#allocation8 + $0x438] sm:$0xff] }
 0x139   : > { %3502 = vmatpush1.bf16.msra.mxu0 %v3501_v38  ;;  %v1370_v38 = vld [vmem:[#allocation8 + $0x700] sm:$0xff]  ;;  %v1297_v32 = vld [vmem:[#allocation8 + $0x4b8] sm:$0xff]  ;;  %v3605_v34 = vpack.c.bf16 %v1264_v28, %v1248_v26  ;;  %v1392_v14 = vld [vmem:[#allocation8 + $0x7b0] sm:$0xff] }
 0x13a   : > { %3534 = vmatpush1.bf16.msra.mxu1 %v3533_v39  ;;  %3504 = vmatprep.subr.bf16.mxu0 %v3503_v40  ;;  %v1386_v39 = vld [vmem:[#allocation8 + $0x780] sm:$0xff]  ;;  %v1372_v40 = vld [vmem:[#allocation8 + $0x710] sm:$0xff]  ;;  %v1203_v28 = vld [vmem:[#allocation8 + $0x1c8] sm:$0xff] }
 0x13b   : > { %3536 = vmatprep.subr.bf16.mxu1 %v3535_v44  ;;  %v1167_v44 = vld [vmem:[#allocation8 + $0xa8] sm:$0xff]  ;;  %v3525_v47 = vpack.c.bf16 %v1386_v39, %v1370_v38  ;;  %v3557_v49 = vpack.c.bf16 %v1388_v42, %v1372_v40  ;;  %v1280_v38 = vld [vmem:[#allocation8 + $0x430] sm:$0xff]  ;;  %v3607_v39 = vpack.c.bf16 %v1297_v32, %v1281_v31 }
 0x13c   : > { %v3559_v50 = vpack.c.bf16 %v1167_v44, %v1151_v43  ;;  %v1296_v40 = vld [vmem:[#allocation8 + $0x4b0] sm:$0xff]  ;;  %v1327_v42 = vld [vmem:[#allocation8 + $0x5a8] sm:$0xff]  ;;  %v1313_v43 = vld [vmem:[#allocation8 + $0x538] sm:$0xff] }
 0x13d   : > { %3506 = vmatpush1.bf16.msra.mxu0 %v3505_v48  ;;  %v1150_v48 = vld [vmem:[#allocation8 + $0x20] sm:$0xff]  ;;  %v1329_v44 = vld [vmem:[#allocation8 + $0x5b8] sm:$0xff]  ;;  %v3609_v46 = vpack.c.bf16 %v1296_v40, %v1280_v38  ;;  %v1172_v26 = vld [vmem:[#allocation8 + $0xd0] sm:$0xff] }
 0x13e   : > { %3538 = vmatpush1.bf16.msra.mxu1 %v3537_v51  ;;  %3508 = vmatprep.subr.bf16.mxu0 %v3507_v52  ;;  %v1166_v51 = vld [vmem:[#allocation8 + $0xa0] sm:$0xff]  ;;  %v1152_v52 = vld [vmem:[#allocation8 + $0x30] sm:$0xff]  ;;  %v1235_v40 = vld [vmem:[#allocation8 + $0x2c8] sm:$0xff] }
 0x13f   : > { %3540 = vmatprep.subr.bf16.mxu1 %v3539_v56  ;;  %v1199_v56 = vld [vmem:[#allocation8 + $0x1a8] sm:$0xff]  ;;  %v3561_v60 = vpack.c.bf16 %v1166_v51, %v1150_v48  ;;  %v3593_v61 = vpack.c.bf16 %v1168_v54, %v1152_v52  ;;  %v1312_v48 = vld [vmem:[#allocation8 + $0x530] sm:$0xff]  ;;  %v3611_v51 = vpack.c.bf16 %v1329_v44, %v1313_v43 }
 0x140   : > { %v1328_v52 = vld [vmem:[#allocation8 + $0x5b0] sm:$0xff]  ;;  %v1359_v54 = vld [vmem:[#allocation8 + $0x6a8] sm:$0xff] }
 0x141   : > { %3510 = vmatpush1.bf16.msra.mxu0 %v3509_v62  ;;  %v3563_v62 = vpack.c.bf16 %v1199_v56, %v1183_v55  ;;  %v1345_v55 = vld [vmem:[#allocation8 + $0x638] sm:$0xff]  ;;  %v3613_v58 = vpack.c.bf16 %v1328_v52, %v1312_v48  ;;  %v1204_v38 = vld [vmem:[#allocation8 + $0x1d0] sm:$0xff]  ;;  %v1267_v52 = vld [vmem:[#allocation8 + $0x3c8] sm:$0xff] }
 0x142   : > { %3542 = vmatpush1.bf16.msra.mxu1 %v3541_v63  ;;  %3512 = vmatprep.subr.bf16.mxu0 %v3511_v1  ;;  %v1182_v63 = vld [vmem:[#allocation8 + $0x120] sm:$0xff]  ;;  %v1361_v56 = vld [vmem:[#allocation8 + $0x6b8] sm:$0xff]  ;;  %v1236_v48 = vld [vmem:[#allocation8 + $0x2d0] sm:$0xff] }
 0x143   : > { %3544 = vmatprep.subr.bf16.mxu1 %v3543_v5  ;;  %v1198_v1 = vld [vmem:[#allocation8 + $0x1a0] sm:$0xff]  ;;  %v1215_v5 = vld [vmem:[#allocation8 + $0x228] sm:$0xff] }
 0x144   : > { %v3565_v9 = vpack.c.bf16 %v1198_v1, %v1182_v63  ;;  %v1344_v63 = vld [vmem:[#allocation8 + $0x630] sm:$0xff]  ;;  %v3615_v1 = vpack.c.bf16 %v1361_v56, %v1345_v55 }
 0x145   : > { %3514 = vmatpush1.bf16.msra.mxu0 %v3513_v11  ;;  %v3567_v11 = vpack.c.bf16 %v1231_v6, %v1215_v5  ;;  %v1377_v5 = vld [vmem:[#allocation8 + $0x738] sm:$0xff]  ;;  %v3617_v8 = vpack.c.bf16 %v1360_v2, %v1344_v63  ;;  %v1268_v63 = vld [vmem:[#allocation8 + $0x3d0] sm:$0xff]  ;;  %v1299_v2 = vld [vmem:[#allocation8 + $0x4c8] sm:$0xff] }
 0x146   : > { %3546 = vmatpush1.bf16.msra.mxu1 %v3545_v12  ;;  %3516 = vmatprep.subr.bf16.mxu0 %v3515_v13  ;;  %v1214_v12 = vld [vmem:[#allocation8 + $0x220] sm:$0xff]  ;;  %v1393_v6 = vld [vmem:[#allocation8 + $0x7b8] sm:$0xff] }
 0x147   : > { %3548 = vmatprep.subr.bf16.mxu1 %v3547_v17  ;;  %v1230_v13 = vld [vmem:[#allocation8 + $0x2a0] sm:$0xff]  ;;  %v1247_v17 = vld [vmem:[#allocation8 + $0x328] sm:$0xff] }
 0x148   : > { %v3569_v21 = vpack.c.bf16 %v1230_v13, %v1214_v12  ;;  %v1376_v12 = vld [vmem:[#allocation8 + $0x730] sm:$0xff]  ;;  %v3619_v13 = vpack.c.bf16 %v1393_v6, %v1377_v5 }
 0x149   : > { %3518 = vmatpush1.bf16.msra.mxu0 %v3517_v23  ;;  %v3571_v23 = vpack.c.bf16 %v1263_v18, %v1247_v17  ;;  %v1157_v17 = vld [vmem:[#allocation8 + $0x58] sm:$0xff]  ;;  %v3621_v20 = vpack.c.bf16 %v1392_v14, %v1376_v12  ;;  %v1300_v12 = vld [vmem:[#allocation8 + $0x4d0] sm:$0xff]  ;;  %v1331_v14 = vld [vmem:[#allocation8 + $0x5c8] sm:$0xff] }
 0x14a   : > { %3550 = vmatpush1.bf16.msra.mxu1 %v3549_v24  ;;  %3520 = vmatprep.subr.bf16.mxu0 %v3519_v25  ;;  %v1246_v24 = vld [vmem:[#allocation8 + $0x320] sm:$0xff]  ;;  %v1173_v18 = vld [vmem:[#allocation8 + $0xd8] sm:$0xff] }
 0x14b   : > { %3552 = vmatprep.subr.bf16.mxu1 %v3551_v29  ;;  %v1262_v25 = vld [vmem:[#allocation8 + $0x3a0] sm:$0xff]  ;;  %v1279_v29 = vld [vmem:[#allocation8 + $0x428] sm:$0xff] }
 0x14c   : > { %v3573_v33 = vpack.c.bf16 %v1262_v25, %v1246_v24  ;;  %v1156_v24 = vld [vmem:[#allocation8 + $0x50] sm:$0xff]  ;;  %v3655_v25 = vpack.c.bf16 %v1173_v18, %v1157_v17 }
 0x14d   : > { %3522 = vmatpush1.bf16.msra.mxu0 %v3521_v35  ;;  %v3575_v35 = vpack.c.bf16 %v1295_v30, %v1279_v29  ;;  %v1189_v29 = vld [vmem:[#allocation8 + $0x158] sm:$0xff]  ;;  %v3657_v32 = vpack.c.bf16 %v1172_v26, %v1156_v24  ;;  %v1332_v24 = vld [vmem:[#allocation8 + $0x5d0] sm:$0xff]  ;;  %v1363_v26 = vld [vmem:[#allocation8 + $0x6c8] sm:$0xff] }
 0x14e   : > { %3554 = vmatpush1.bf16.msra.mxu1 %v3553_v36  ;;  %3524 = vmatprep.subr.bf16.mxu0 %v3523_v37  ;;  %v1278_v36 = vld [vmem:[#allocation8 + $0x420] sm:$0xff]  ;;  %v1205_v30 = vld [vmem:[#allocation8 + $0x1d8] sm:$0xff] }
 0x14f   : > { %3556 = vmatprep.subr.bf16.mxu1 %v3555_v41  ;;  %v1294_v37 = vld [vmem:[#allocation8 + $0x4a0] sm:$0xff]  ;;  %v1311_v41 = vld [vmem:[#allocation8 + $0x528] sm:$0xff] }
 0x150   : > { %v3577_v45 = vpack.c.bf16 %v1294_v37, %v1278_v36  ;;  %v1188_v36 = vld [vmem:[#allocation8 + $0x150] sm:$0xff]  ;;  %v3659_v37 = vpack.c.bf16 %v1205_v30, %v1189_v29 }
 0x151   : > { %3526 = vmatpush1.bf16.msra.mxu0 %v3525_v47  ;;  %v3579_v47 = vpack.c.bf16 %v1327_v42, %v1311_v41  ;;  %v1221_v41 = vld [vmem:[#allocation8 + $0x258] sm:$0xff]  ;;  %v3661_v44 = vpack.c.bf16 %v1204_v38, %v1188_v36  ;;  %v1364_v36 = vld [vmem:[#allocation8 + $0x6d0] sm:$0xff]  ;;  %v1395_v38 = vld [vmem:[#allocation8 + $0x7c8] sm:$0xff] }
 0x152   : > { %3558 = vmatpush1.bf16.msra.mxu1 %v3557_v49  ;;  %3560 = vmatprep.subr.bf16.mxu0 %v3559_v50  ;;  %v1310_v49 = vld [vmem:[#allocation8 + $0x520] sm:$0xff]  ;;  %v1237_v42 = vld [vmem:[#allocation8 + $0x2d8] sm:$0xff] }
 0x153   : > { %3592 = vmatprep.subr.bf16.mxu1 %v3591_v53  ;;  %v1326_v50 = vld [vmem:[#allocation8 + $0x5a0] sm:$0xff]  ;;  %v1343_v53 = vld [vmem:[#allocation8 + $0x628] sm:$0xff] }
 0x154   : > { %1467 = vmatmul.mubr.f32.vlgmr.msra.gmra.mrb[8].mxu0 %v4631_v59  ;;  %v3581_v57 = vpack.c.bf16 %v1326_v50, %v1310_v49  ;;  %v1220_v49 = vld [vmem:[#allocation8 + $0x250] sm:$0xff]  ;;  %v3663_v50 = vpack.c.bf16 %v1237_v42, %v1221_v41 }
 0x155   : > { %1538 = vmatmul.mubr.f32.vlgmr.msra.gmra.mrb[8].mxu1 %v4631_v59  ;;  %3562 = vmatpush1.bf16.msra.mxu0 %v3561_v60  ;;  %v3583_v60 = vpack.c.bf16 %v1359_v54, %v1343_v53  ;;  %v1253_v53 = vld [vmem:[#allocation8 + $0x358] sm:$0xff]  ;;  %v3665_v56 = vpack.c.bf16 %v1236_v48, %v1220_v49  ;;  %v1396_v49 = vld [vmem:[#allocation8 + $0x7d0] sm:$0xff]  ;;  %v1175_v48 = vld [vmem:[#allocation8 + $0xe8] sm:$0xff] }
 0x156   : > { %3594 = vmatpush1.bf16.msra.mxu1 %v3593_v61  ;;  %3564 = vmatprep.subr.bf16.mxu0 %v3563_v62  ;;  %v1342_v61 = vld [vmem:[#allocation8 + $0x620] sm:$0xff]  ;;  %v1269_v54 = vld [vmem:[#allocation8 + $0x3d8] sm:$0xff] }
 0x157   : > { %3596 = vmatprep.subr.bf16.mxu1 %v3595_v3  ;;  %1608 = vmatprep.mubr.f32.mxu0 %v4325_v0  ;;  %v1358_v62 = vld [vmem:[#allocation8 + $0x6a0] sm:$0xff]  ;;  %v1375_v3 = vld [vmem:[#allocation8 + $0x728] sm:$0xff] }
 0x158   : > { %1679 = vmatprep.mubr.f32.mxu1 %v4325_v0  ;;  %v3585_v7 = vpack.c.bf16 %v1358_v62, %v1342_v61  ;;  %v1252_v61 = vld [vmem:[#allocation8 + $0x350] sm:$0xff]  ;;  %v3667_v62 = vpack.c.bf16 %v1269_v54, %v1253_v53 }
 0x159   : > { %3566 = vmatpush1.bf16.msra.mxu0 %v3565_v9  ;;  %v3587_v9 = vpack.c.bf16 %v1391_v4, %v1375_v3  ;;  %v1285_v3 = vld [vmem:[#allocation8 + $0x458] sm:$0xff]  ;;  %v3669_v6 = vpack.c.bf16 %v1268_v63, %v1252_v61  ;;  %v1176_v61 = vld [vmem:[#allocation8 + $0xf0] sm:$0xff]  ;;  %v1207_v63 = vld [vmem:[#allocation8 + $0x1e8] sm:$0xff] }
 0x15a   : > { %3598 = vmatpush1.bf16.msra.mxu1 %v3597_v10  ;;  %3568 = vmatprep.subr.bf16.mxu0 %v3567_v11  ;;  %v1374_v10 = vld [vmem:[#allocation8 + $0x720] sm:$0xff]  ;;  %v1301_v4 = vld [vmem:[#allocation8 + $0x4d8] sm:$0xff] }
 0x15b   : > { %3600 = vmatprep.subr.bf16.mxu1 %v3599_v15  ;;  %v1390_v11 = vld [vmem:[#allocation8 + $0x7a0] sm:$0xff]  ;;  %v1155_v15 = vld [vmem:[#allocation8 + $0x48] sm:$0xff] }
 0x15c   : > { %v3589_v19 = vpack.c.bf16 %v1390_v11, %v1374_v10  ;;  %v1284_v10 = vld [vmem:[#allocation8 + $0x450] sm:$0xff]  ;;  %v3671_v11 = vpack.c.bf16 %v1301_v4, %v1285_v3 }
 0x15d   : > { %3570 = vmatpush1.bf16.msra.mxu0 %v3569_v21  ;;  %v3623_v21 = vpack.c.bf16 %v1171_v16, %v1155_v15  ;;  %v1317_v15 = vld [vmem:[#allocation8 + $0x558] sm:$0xff]  ;;  %v3673_v18 = vpack.c.bf16 %v1300_v12, %v1284_v10  ;;  %v1208_v10 = vld [vmem:[#allocation8 + $0x1f0] sm:$0xff]  ;;  %v1239_v12 = vld [vmem:[#allocation8 + $0x2e8] sm:$0xff] }
 0x15e   : > { %3602 = vmatpush1.bf16.msra.mxu1 %v3601_v22  ;;  %3572 = vmatprep.subr.bf16.mxu0 %v3571_v23  ;;  %v1154_v22 = vld [vmem:[#allocation8 + $0x40] sm:$0xff]  ;;  %v1333_v16 = vld [vmem:[#allocation8 + $0x5d8] sm:$0xff] }
 0x15f   : > { %3604 = vmatprep.subr.bf16.mxu1 %v3603_v27  ;;  %v1170_v23 = vld [vmem:[#allocation8 + $0xc0] sm:$0xff]  ;;  %v1187_v27 = vld [vmem:[#allocation8 + $0x148] sm:$0xff] }
 0x160   : > { %v3625_v31 = vpack.c.bf16 %v1170_v23, %v1154_v22  ;;  %v1316_v22 = vld [vmem:[#allocation8 + $0x550] sm:$0xff]  ;;  %v3675_v23 = vpack.c.bf16 %v1333_v16, %v1317_v15 }
 0x161   : > { %3574 = vmatpush1.bf16.msra.mxu0 %v3573_v33  ;;  %v3627_v33 = vpack.c.bf16 %v1203_v28, %v1187_v27  ;;  %v1349_v27 = vld [vmem:[#allocation8 + $0x658] sm:$0xff]  ;;  %v3677_v30 = vpack.c.bf16 %v1332_v24, %v1316_v22  ;;  %v1240_v22 = vld [vmem:[#allocation8 + $0x2f0] sm:$0xff]  ;;  %v1271_v24 = vld [vmem:[#allocation8 + $0x3e8] sm:$0xff] }
 0x162   : > { %3606 = vmatpush1.bf16.msra.mxu1 %v3605_v34  ;;  %3576 = vmatprep.subr.bf16.mxu0 %v3575_v35  ;;  %v1186_v34 = vld [vmem:[#allocation8 + $0x140] sm:$0xff]  ;;  %v1365_v28 = vld [vmem:[#allocation8 + $0x6d8] sm:$0xff] }
 0x163   : > { %3608 = vmatprep.subr.bf16.mxu1 %v3607_v39  ;;  %v1202_v35 = vld [vmem:[#allocation8 + $0x1c0] sm:$0xff]  ;;  %v1219_v39 = vld [vmem:[#allocation8 + $0x248] sm:$0xff] }
 0x164   : > { %v3629_v43 = vpack.c.bf16 %v1202_v35, %v1186_v34  ;;  %v1348_v34 = vld [vmem:[#allocation8 + $0x650] sm:$0xff]  ;;  %v3679_v35 = vpack.c.bf16 %v1365_v28, %v1349_v27 }
 0x165   : > { %3578 = vmatpush1.bf16.msra.mxu0 %v3577_v45  ;;  %v3631_v45 = vpack.c.bf16 %v1235_v40, %v1219_v39  ;;  %v1381_v39 = vld [vmem:[#allocation8 + $0x758] sm:$0xff]  ;;  %v3681_v42 = vpack.c.bf16 %v1364_v36, %v1348_v34  ;;  %v1272_v34 = vld [vmem:[#allocation8 + $0x3f0] sm:$0xff]  ;;  %v1303_v36 = vld [vmem:[#allocation8 + $0x4e8] sm:$0xff] }
 0x166   : > { %3610 = vmatpush1.bf16.msra.mxu1 %v3609_v46  ;;  %3580 = vmatprep.subr.bf16.mxu0 %v3579_v47  ;;  %v1218_v46 = vld [vmem:[#allocation8 + $0x240] sm:$0xff]  ;;  %v1397_v40 = vld [vmem:[#allocation8 + $0x7d8] sm:$0xff] }
 0x167   : > { %3612 = vmatprep.subr.bf16.mxu1 %v3611_v51  ;;  %v1234_v47 = vld [vmem:[#allocation8 + $0x2c0] sm:$0xff]  ;;  %v1251_v51 = vld [vmem:[#allocation8 + $0x348] sm:$0xff] }
 0x168   : > { %v3633_v55 = vpack.c.bf16 %v1234_v47, %v1218_v46  ;;  %v1380_v46 = vld [vmem:[#allocation8 + $0x750] sm:$0xff]  ;;  %v3683_v47 = vpack.c.bf16 %v1397_v40, %v1381_v39 }
 0x169   : > { %3582 = vmatpush1.bf16.msra.mxu0 %v3581_v57  ;;  %v3635_v57 = vpack.c.bf16 %v1267_v52, %v1251_v51  ;;  %v1161_v51 = vld [vmem:[#allocation8 + $0x78] sm:$0xff]  ;;  %v3685_v54 = vpack.c.bf16 %v1396_v49, %v1380_v46  ;;  %v1319_v46 = vld [vmem:[#allocation8 + $0x568] sm:$0xff] }
 0x16a   : > { %3614 = vmatpush1.bf16.msra.mxu1 %v3613_v58  ;;  %3584 = vmatprep.subr.bf16.mxu0 %v3583_v60  ;;  %v1250_v58 = vld [vmem:[#allocation8 + $0x340] sm:$0xff]  ;;  %v1177_v52 = vld [vmem:[#allocation8 + $0xf8] sm:$0xff] }
 0x16b   : > { %3616 = vmatprep.subr.bf16.mxu1 %v3615_v1  ;;  %v1266_v60 = vld [vmem:[#allocation8 + $0x3c0] sm:$0xff]  ;;  %v1283_v1 = vld [vmem:[#allocation8 + $0x448] sm:$0xff]  ;;  %v1321_v49 = vld [vmem:[#allocation8 + $0x578] sm:$0xff] }
 0x16c   : > { %v3637_v5 = vpack.c.bf16 %v1266_v60, %v1250_v58  ;;  %v1160_v58 = vld [vmem:[#allocation8 + $0x70] sm:$0xff]  ;;  %v3719_v60 = vpack.c.bf16 %v1177_v52, %v1161_v51 }
 0x16d   : > { %3586 = vmatpush1.bf16.msra.mxu0 %v3585_v7  ;;  %v3639_v7 = vpack.c.bf16 %v1299_v2, %v1283_v1  ;;  %v1193_v1 = vld [vmem:[#allocation8 + $0x178] sm:$0xff]  ;;  %v3721_v4 = vpack.c.bf16 %v1176_v61, %v1160_v58  ;;  %v1351_v58 = vld [vmem:[#allocation8 + $0x668] sm:$0xff] }
 0x16e   : > { %3618 = vmatpush1.bf16.msra.mxu1 %v3617_v8  ;;  %3588 = vmatprep.subr.bf16.mxu0 %v3587_v9  ;;  %v1282_v8 = vld [vmem:[#allocation8 + $0x440] sm:$0xff]  ;;  %v1209_v2 = vld [vmem:[#allocation8 + $0x1f8] sm:$0xff] }
 0x16f   : > { %3620 = vmatprep.subr.bf16.mxu1 %v3619_v13  ;;  %v1298_v9 = vld [vmem:[#allocation8 + $0x4c0] sm:$0xff]  ;;  %v1315_v13 = vld [vmem:[#allocation8 + $0x548] sm:$0xff]  ;;  %v1353_v61 = vld [vmem:[#allocation8 + $0x678] sm:$0xff] }
 0x170   : > { %v3641_v17 = vpack.c.bf16 %v1298_v9, %v1282_v8  ;;  %v1192_v8 = vld [vmem:[#allocation8 + $0x170] sm:$0xff]  ;;  %v3723_v9 = vpack.c.bf16 %v1209_v2, %v1193_v1 }
 0x171   : > { %3590 = vmatpush1.bf16.msra.mxu0 %v3589_v19  ;;  %v3643_v19 = vpack.c.bf16 %v1331_v14, %v1315_v13  ;;  %v1225_v13 = vld [vmem:[#allocation8 + $0x278] sm:$0xff]  ;;  %v3725_v16 = vpack.c.bf16 %v1208_v10, %v1192_v8  ;;  %v1368_v8 = vld [vmem:[#allocation8 + $0x6f0] sm:$0xff]  ;;  %v1399_v10 = vld [vmem:[#allocation8 + $0x7e8] sm:$0xff] }
 0x172   : > { %3622 = vmatpush1.bf16.msra.mxu1 %v3621_v20  ;;  %3624 = vmatprep.subr.bf16.mxu0 %v3623_v21  ;;  %v1314_v20 = vld [vmem:[#allocation8 + $0x540] sm:$0xff]  ;;  %v1241_v14 = vld [vmem:[#allocation8 + $0x2f8] sm:$0xff] }
 0x173   : > { %3656 = vmatprep.subr.bf16.mxu1 %v3655_v25  ;;  %v1330_v21 = vld [vmem:[#allocation8 + $0x5c0] sm:$0xff]  ;;  %v1347_v25 = vld [vmem:[#allocation8 + $0x648] sm:$0xff] }
 0x174   : > { %1609 = vmatmul.mubr.f32.vlgmr.msra.gmra.mrb[10].mxu0 %v4631_v59  ;;  %v3645_v29 = vpack.c.bf16 %v1330_v21, %v1314_v20  ;;  %v1224_v20 = vld [vmem:[#allocation8 + $0x270] sm:$0xff]  ;;  %v3727_v21 = vpack.c.bf16 %v1241_v14, %v1225_v13  ;;  %v1385_v13 = vld [vmem:[#allocation8 + $0x778] sm:$0xff] }
 0x175   : > { %1680 = vmatmul.mubr.f32.vlgmr.msra.gmra.mrb[10].mxu1 %v4631_v59  ;;  %3626 = vmatpush1.bf16.msra.mxu0 %v3625_v31  ;;  %v3647_v31 = vpack.c.bf16 %v1363_v26, %v1347_v25  ;;  %v1257_v25 = vld [vmem:[#allocation8 + $0x378] sm:$0xff]  ;;  %v3729_v28 = vpack.c.bf16 %v1240_v22, %v1224_v20  ;;  %v1398_v20 = vld [vmem:[#allocation8 + $0x7e0] sm:$0xff] }
 0x176   : > { %3658 = vmatpush1.bf16.msra.mxu1 %v3657_v32  ;;  %3628 = vmatprep.subr.bf16.mxu0 %v3627_v33  ;;  %v1346_v32 = vld [vmem:[#allocation8 + $0x640] sm:$0xff]  ;;  %v1273_v26 = vld [vmem:[#allocation8 + $0x3f8] sm:$0xff] }
 0x177   : > { %3660 = vmatprep.subr.bf16.mxu1 %v3659_v37  ;;  %1750 = vmatprep.mubr.f32.mxu0 %v4325_v0  ;;  %v1362_v33 = vld [vmem:[#allocation8 + $0x6c0] sm:$0xff]  ;;  %v1379_v37 = vld [vmem:[#allocation8 + $0x748] sm:$0xff]  ;;  %v1401_v14 = vld [vmem:[#allocation8 + $0x7f8] sm:$0xff] }
 0x178   : > { %1821 = vmatprep.mubr.f32.mxu1 %v4325_v0  ;;  %v3649_v41 = vpack.c.bf16 %v1362_v33, %v1346_v32  ;;  %v1256_v32 = vld [vmem:[#allocation8 + $0x370] sm:$0xff]  ;;  %v3731_v33 = vpack.c.bf16 %v1273_v26, %v1257_v25  ;;  %v3747_v22 = vpack.c.bf16 %v1401_v14, %v1385_v13  ;;  %v2003_v25 = vld [vmem:[#allocation10 + $0x88] sm:$0xff]  ;;  %v2034_v26 = vld [vmem:[#allocation10 + $0x180] sm:$0xff] }
 0x179   : > { %3630 = vmatpush1.bf16.msra.mxu0 %v3629_v43  ;;  %v3651_v43 = vpack.c.bf16 %v1395_v38, %v1379_v37  ;;  %v1289_v37 = vld [vmem:[#allocation8 + $0x478] sm:$0xff]  ;;  %v2042_v13 = vld [vmem:[#allocation10 + $0x1c0] sm:$0xff]  ;;  %v2043_v14 = vld [vmem:[#allocation10 + $0x1c8] sm:$0xff] }
 0x17a   : > { %3662 = vmatpush1.bf16.msra.mxu1 %v3661_v44  ;;  %3632 = vmatprep.subr.bf16.mxu0 %v3631_v45  ;;  %v1378_v44 = vld [vmem:[#allocation8 + $0x740] sm:$0xff]  ;;  %v1305_v38 = vld [vmem:[#allocation8 + $0x4f8] sm:$0xff] }
 0x17b   : > { %3664 = vmatprep.subr.bf16.mxu1 %v3663_v50  ;;  %v1394_v45 = vld [vmem:[#allocation8 + $0x7c0] sm:$0xff]  ;;  %v1159_v50 = vld [vmem:[#allocation8 + $0x68] sm:$0xff] }
 0x17c   : > { %v3653_v53 = vpack.c.bf16 %v1394_v45, %v1378_v44  ;;  %v3735_v44 = vpack.c.bf16 %v1305_v38, %v1289_v37  ;;  %v1304_v45 = vld [vmem:[#allocation8 + $0x4f0] sm:$0xff]  ;;  %v2005_v37 = vld [vmem:[#allocation10 + $0x98] sm:$0xff] }
 0x17d   : > { %3634 = vmatpush1.bf16.msra.mxu0 %v3633_v55  ;;  %v3687_v55 = vpack.c.bf16 %v1175_v48, %v1159_v50  ;;  %v1337_v50 = vld [vmem:[#allocation8 + $0x5f8] sm:$0xff]  ;;  %v2036_v38 = vld [vmem:[#allocation10 + $0x190] sm:$0xff] }
 0x17e   : > { %3666 = vmatpush1.bf16.msra.mxu1 %v3665_v56  ;;  %3636 = vmatprep.subr.bf16.mxu0 %v3635_v57  ;;  %v1158_v56 = vld [vmem:[#allocation8 + $0x60] sm:$0xff] }
 0x17f   : > { %3668 = vmatprep.subr.bf16.mxu1 %v3667_v62  ;;  %v1174_v57 = vld [vmem:[#allocation8 + $0xe0] sm:$0xff]  ;;  %v1191_v62 = vld [vmem:[#allocation8 + $0x168] sm:$0xff] }
 0x180   : > { %v3689_v3 = vpack.c.bf16 %v1174_v57, %v1158_v56  ;;  %v3739_v56 = vpack.c.bf16 %v1337_v50, %v1321_v49  ;;  %v1336_v57 = vld [vmem:[#allocation8 + $0x5f0] sm:$0xff]  ;;  %v2007_v49 = vld [vmem:[#allocation10 + $0xa8] sm:$0xff]  ;;  %v2038_v50 = vld [vmem:[#allocation10 + $0x1a0] sm:$0xff] }
 0x181   : > { %3638 = vmatpush1.bf16.msra.mxu0 %v3637_v5  ;;  %v3691_v5 = vpack.c.bf16 %v1207_v63, %v1191_v62  ;;  %v1369_v62 = vld [vmem:[#allocation8 + $0x6f8] sm:$0xff] }
 0x182   : > { %3670 = vmatpush1.bf16.msra.mxu1 %v3669_v6  ;;  %3640 = vmatprep.subr.bf16.mxu0 %v3639_v7  ;;  %v1190_v6 = vld [vmem:[#allocation8 + $0x160] sm:$0xff] }
 0x183   : > { %3672 = vmatprep.subr.bf16.mxu1 %v3671_v11  ;;  %v1206_v7 = vld [vmem:[#allocation8 + $0x1e0] sm:$0xff]  ;;  %v1223_v11 = vld [vmem:[#allocation8 + $0x268] sm:$0xff] }
 0x184   : > { %v3693_v15 = vpack.c.bf16 %v1206_v7, %v1190_v6  ;;  %v3743_v7 = vpack.c.bf16 %v1369_v62, %v1353_v61  ;;  %v2009_v61 = vld [vmem:[#allocation10 + $0xb8] sm:$0xff]  ;;  %v2040_v62 = vld [vmem:[#allocation10 + $0x1b0] sm:$0xff] }
 0x185   : > { %3642 = vmatpush1.bf16.msra.mxu0 %v3641_v17  ;;  %v3695_v17 = vpack.c.bf16 %v1239_v12, %v1223_v11 }
 0x186   : > { %3674 = vmatpush1.bf16.msra.mxu1 %v3673_v18  ;;  %3644 = vmatprep.subr.bf16.mxu0 %v3643_v19  ;;  %v1222_v18 = vld [vmem:[#allocation8 + $0x260] sm:$0xff] }
 0x187   : > { %3676 = vmatprep.subr.bf16.mxu1 %v3675_v23  ;;  %v1238_v19 = vld [vmem:[#allocation8 + $0x2e0] sm:$0xff]  ;;  %v1255_v23 = vld [vmem:[#allocation8 + $0x368] sm:$0xff] }
 0x188   : > { %v3697_v27 = vpack.c.bf16 %v1238_v19, %v1222_v18  ;;  %v1382_v19 = vld [vmem:[#allocation8 + $0x760] sm:$0xff] }
 0x189   : > { %3646 = vmatpush1.bf16.msra.mxu0 %v3645_v29  ;;  %v3699_v29 = vpack.c.bf16 %v1271_v24, %v1255_v23  ;;  %v1400_v23 = vld [vmem:[#allocation8 + $0x7f0] sm:$0xff]  ;;  %v2002_v24 = vld [vmem:[#allocation10 + $0x80] sm:$0xff] }
 0x18a   : > { %3678 = vmatpush1.bf16.msra.mxu1 %v3677_v30  ;;  %3648 = vmatprep.subr.bf16.mxu0 %v3647_v31  ;;  %v1254_v30 = vld [vmem:[#allocation8 + $0x360] sm:$0xff] }
 0x18b   : > { %3680 = vmatprep.subr.bf16.mxu1 %v3679_v35  ;;  %v1270_v31 = vld [vmem:[#allocation8 + $0x3e0] sm:$0xff]  ;;  %v1287_v35 = vld [vmem:[#allocation8 + $0x468] sm:$0xff] }
 0x18c   : > { %v3701_v39 = vpack.c.bf16 %v1270_v31, %v1254_v30  ;;  %v3703_v40 = vpack.c.bf16 %v1303_v36, %v1287_v35  ;;  %v3751_v30 = vpack.c.bf16 %v2003_v25, %v2002_v24  ;;  %v1986_v31 = vld [vmem:[#allocation10] sm:$0xff]  ;;  %v2019_v35 = vld [vmem:[#allocation10 + $0x108] sm:$0xff]  ;;  %v2004_v36 = vld [vmem:[#allocation10 + $0x90] sm:$0xff] }
 0x18d   : > { %3650 = vmatpush1.bf16.msra.mxu0 %v3649_v41  ;;  %v1286_v41 = vld [vmem:[#allocation8 + $0x460] sm:$0xff]  ;;  %v2012_v24 = vld [vmem:[#allocation10 + $0xd0] sm:$0xff]  ;;  %v2013_v25 = vld [vmem:[#allocation10 + $0xd8] sm:$0xff] }
 0x18e   : > { %3682 = vmatpush1.bf16.msra.mxu1 %v3681_v42  ;;  %3652 = vmatprep.subr.bf16.mxu0 %v3651_v43  ;;  %v1302_v42 = vld [vmem:[#allocation8 + $0x4e0] sm:$0xff]  ;;  %v1288_v43 = vld [vmem:[#allocation8 + $0x470] sm:$0xff] }
 0x18f   : > { %3684 = vmatprep.subr.bf16.mxu1 %v3683_v47  ;;  %v1335_v47 = vld [vmem:[#allocation8 + $0x5e8] sm:$0xff]  ;;  %v3705_v48 = vpack.c.bf16 %v1302_v42, %v1286_v41  ;;  %v3737_v51 = vpack.c.bf16 %v1304_v45, %v1288_v43  ;;  %v3755_v41 = vpack.c.bf16 %v2005_v37, %v2004_v36  ;;  %v1988_v42 = vld [vmem:[#allocation10 + $0x10] sm:$0xff]  ;;  %v1989_v43 = vld [vmem:[#allocation10 + $0x18] sm:$0xff] }
 0x190   : > { %v3707_v52 = vpack.c.bf16 %v1335_v47, %v1319_v46  ;;  %v2021_v46 = vld [vmem:[#allocation10 + $0x118] sm:$0xff]  ;;  %v2006_v47 = vld [vmem:[#allocation10 + $0xa0] sm:$0xff]  ;;  %v2015_v37 = vld [vmem:[#allocation10 + $0xe8] sm:$0xff] }
 0x191   : > { %3654 = vmatpush1.bf16.msra.mxu0 %v3653_v53  ;;  %v1318_v53 = vld [vmem:[#allocation8 + $0x560] sm:$0xff] }
 0x192   : > { %3686 = vmatpush1.bf16.msra.mxu1 %v3685_v54  ;;  %3688 = vmatprep.subr.bf16.mxu0 %v3687_v55  ;;  %v1334_v54 = vld [vmem:[#allocation8 + $0x5e0] sm:$0xff]  ;;  %v1320_v55 = vld [vmem:[#allocation8 + $0x570] sm:$0xff] }
 0x193   : > { %3720 = vmatprep.subr.bf16.mxu1 %v3719_v60  ;;  %v1367_v60 = vld [vmem:[#allocation8 + $0x6e8] sm:$0xff]  ;;  %v3709_v63 = vpack.c.bf16 %v1334_v54, %v1318_v53  ;;  %v3741_v1 = vpack.c.bf16 %v1336_v57, %v1320_v55  ;;  %v3759_v53 = vpack.c.bf16 %v2007_v49, %v2006_v47  ;;  %v1990_v54 = vld [vmem:[#allocation10 + $0x20] sm:$0xff]  ;;  %v2016_v49 = vld [vmem:[#allocation10 + $0xf0] sm:$0xff] }
 0x194   : > { %1751 = vmatmul.mubr.f32.vlgmr.msra.gmra.mrb[12].mxu0 %v4631_v59  ;;  %v3711_v2 = vpack.c.bf16 %v1367_v60, %v1351_v58  ;;  %v1991_v55 = vld [vmem:[#allocation10 + $0x28] sm:$0xff]  ;;  %v2008_v60 = vld [vmem:[#allocation10 + $0xb0] sm:$0xff]  ;;  %v2014_v36 = vld [vmem:[#allocation10 + $0xe0] sm:$0xff] }
 0x195   : > { %1822 = vmatmul.mubr.f32.vlgmr.msra.gmra.mrb[12].mxu1 %v4631_v59  ;;  %3690 = vmatpush1.bf16.msra.mxu0 %v3689_v3  ;;  %v1350_v3 = vld [vmem:[#allocation8 + $0x660] sm:$0xff]  ;;  %v2023_v58 = vld [vmem:[#allocation10 + $0x128] sm:$0xff] }
 0x196   : > { %3722 = vmatpush1.bf16.msra.mxu1 %v3721_v4  ;;  %3692 = vmatprep.subr.bf16.mxu0 %v3691_v5  ;;  %v1366_v4 = vld [vmem:[#allocation8 + $0x6e0] sm:$0xff]  ;;  %v1352_v5 = vld [vmem:[#allocation8 + $0x670] sm:$0xff]  ;;  %v2031_v47 = vld [vmem:[#allocation10 + $0x168] sm:$0xff] }
 0x197   : > { %3724 = vmatprep.subr.bf16.mxu1 %v3723_v9  ;;  %1892 = vmatprep.mubr.f32.mxu0 %v4325_v0  ;;  %v1383_v9 = vld [vmem:[#allocation8 + $0x768] sm:$0xff] }
 0x198   : > { %1963 = vmatprep.mubr.f32.mxu1 %v4325_v0  ;;  %v3733_v0 = vpack.c.bf16 %v1272_v34, %v1256_v32  ;;  %v3715_v18 = vpack.c.bf16 %v1399_v10, %v1383_v9  ;;  %v1987_v32 = vld [vmem:[#allocation10 + $0x8] sm:$0xff]  ;;  %v2010_v9 = vld [vmem:[#allocation10 + $0xc0] sm:$0xff] }
 0x199   : > { %3694 = vmatpush1.bf16.msra.mxu0 %v3693_v15  ;;  %v2011_v10 = vld [vmem:[#allocation10 + $0xc8] sm:$0xff] }
 0x19a   : > { %3726 = vmatpush1.bf16.msra.mxu1 %v3725_v16  ;;  %3696 = vmatprep.subr.bf16.mxu0 %v3695_v17  ;;  %v3713_v16 = vpack.c.bf16 %v1366_v4, %v1350_v3  ;;  %v3745_v17 = vpack.c.bf16 %v1368_v8, %v1352_v5  ;;  %v1992_v3 = vld [vmem:[#allocation10 + $0x30] sm:$0xff]  ;;  %v1993_v4 = vld [vmem:[#allocation10 + $0x38] sm:$0xff] }
 0x19b   : > { %3728 = vmatprep.subr.bf16.mxu1 %v3727_v21  ;;  %v1384_v21 = vld [vmem:[#allocation8 + $0x770] sm:$0xff]  ;;  %v2025_v8 = vld [vmem:[#allocation10 + $0x138] sm:$0xff] }
 0x19c   : > { %v2024_v5 = vld [vmem:[#allocation10 + $0x130] sm:$0xff] }
 0x19d   : > { %3698 = vmatpush1.bf16.msra.mxu0 %v3697_v27  ;;  %v2035_v27 = vld [vmem:[#allocation10 + $0x188] sm:$0xff] }
 0x19e   : > { %3730 = vmatpush1.bf16.msra.mxu1 %v3729_v28  ;;  %3700 = vmatprep.subr.bf16.mxu0 %v3699_v29  ;;  %v3717_v28 = vpack.c.bf16 %v1398_v20, %v1382_v19  ;;  %v3749_v29 = vpack.c.bf16 %v1400_v23, %v1384_v21  ;;  %v3783_v34 = vpack.c.bf16 %v2035_v27, %v2034_v26  ;;  %v1994_v19 = vld [vmem:[#allocation10 + $0x40] sm:$0xff]  ;;  %v1995_v20 = vld [vmem:[#allocation10 + $0x48] sm:$0xff]  ;;  %v2044_v26 = vld [vmem:[#allocation10 + $0x1d0] sm:$0xff] }
 0x19f   : > { %3732 = vmatprep.subr.bf16.mxu1 %v3731_v33  ;;  %v2018_v33 = vld [vmem:[#allocation10 + $0x100] sm:$0xff]  ;;  %v2027_v23 = vld [vmem:[#allocation10 + $0x148] sm:$0xff]  ;;  %v2045_v27 = vld [vmem:[#allocation10 + $0x1d8] sm:$0xff] }
 0x1a0   : > { %v2026_v21 = vld [vmem:[#allocation10 + $0x140] sm:$0xff] }
 0x1a1   : > { %3702 = vmatpush1.bf16.msra.mxu0 %v3701_v39  ;;  %v2037_v39 = vld [vmem:[#allocation10 + $0x198] sm:$0xff] }
 0x1a2   : > { %3734 = vmatpush1.bf16.msra.mxu1 %v3733_v0  ;;  %3704 = vmatprep.subr.bf16.mxu0 %v3703_v40  ;;  %v3753_v0 = vpack.c.bf16 %v1987_v32, %v1986_v31  ;;  %v3785_v40 = vpack.c.bf16 %v2019_v35, %v2018_v33  ;;  %v3787_v45 = vpack.c.bf16 %v2037_v39, %v2036_v38  ;;  %v1996_v31 = vld [vmem:[#allocation10 + $0x50] sm:$0xff]  ;;  %v1997_v32 = vld [vmem:[#allocation10 + $0x58] sm:$0xff]  ;;  %v2046_v38 = vld [vmem:[#allocation10 + $0x1e0] sm:$0xff] }
 0x1a3   : > { %3736 = vmatprep.subr.bf16.mxu1 %v3735_v44  ;;  %v2020_v44 = vld [vmem:[#allocation10 + $0x110] sm:$0xff]  ;;  %v2029_v35 = vld [vmem:[#allocation10 + $0x158] sm:$0xff]  ;;  %v2047_v39 = vld [vmem:[#allocation10 + $0x1e8] sm:$0xff] }
 0x1a4   : > { %v2028_v33 = vld [vmem:[#allocation10 + $0x150] sm:$0xff] }
 0x1a5   : > { %3706 = vmatpush1.bf16.msra.mxu0 %v3705_v48  ;;  %v2039_v48 = vld [vmem:[#allocation10 + $0x1a8] sm:$0xff] }
 0x1a6   : > { %3738 = vmatpush1.bf16.msra.mxu1 %v3737_v51  ;;  %3708 = vmatprep.subr.bf16.mxu0 %v3707_v52  ;;  %v3757_v51 = vpack.c.bf16 %v1989_v43, %v1988_v42  ;;  %v3789_v52 = vpack.c.bf16 %v2021_v46, %v2020_v44  ;;  %v3791_v57 = vpack.c.bf16 %v2039_v48, %v2038_v50  ;;  %v1998_v42 = vld [vmem:[#allocation10 + $0x60] sm:$0xff]  ;;  %v1999_v43 = vld [vmem:[#allocation10 + $0x68] sm:$0xff]  ;;  %v2017_v50 = vld [vmem:[#allocation10 + $0xf8] sm:$0xff] }
 0x1a7   : > { %v4645_v6 = vpop.f32.mrb[0].mxu0  ;;  %3740 = vmatprep.subr.bf16.mxu1 %v3739_v56  ;;  %v2022_v56 = vld [vmem:[#allocation10 + $0x120] sm:$0xff]  ;;  %v3807_v46 = vpack.c.bf16 %v2047_v39, %v2046_v38  ;;  %v2052_v39 = vld [vmem:[#allocation10 + $0x210] sm:$0xff] }
 0x1a8   : > { %v4647_v11 = vpop.f32.mrb[1].mxu0  ;;  %v4649_v12 = vpop.f32.mrb[0].mxu1  ;;  %v2030_v44 = vld [vmem:[#allocation10 + $0x160] sm:$0xff] }
 0x1a9   : > { %3710 = vmatpush1.bf16.msra.mxu0 %v3709_v63  ;;  %v4651_v15 = vpop.f32.mrb[1].mxu1  ;;  %v2041_v63 = vld [vmem:[#allocation10 + $0x1b8] sm:$0xff] }
 0x1aa   : > { %3742 = vmatpush1.bf16.msra.mxu1 %v3741_v1  ;;  %3712 = vmatprep.subr.bf16.mxu0 %v3711_v2  ;;  %v3761_v1 = vpack.c.bf16 %v1991_v55, %v1990_v54  ;;  %v3763_v2 = vpack.c.bf16 %v2009_v61, %v2008_v60  ;;  %v3777_v55 = vpack.c.bf16 %v1999_v43, %v1998_v42  ;;  %v2001_v60 = vld [vmem:[#allocation10 + $0x78] sm:$0xff]  ;;  %v2032_v61 = vld [vmem:[#allocation10 + $0x170] sm:$0xff]  ;;  %v2070_v42 = vld [vmem:[#allocation10 + $0x2a0] sm:$0xff] }
 0x1ab   : > { %3744 = vmatprep.subr.bf16.mxu1 %v3743_v7  ;;  %v3795_v7 = vpack.c.bf16 %v2041_v63, %v2040_v62  ;;  %v2033_v63 = vld [vmem:[#allocation10 + $0x178] sm:$0xff]  ;;  %v2071_v43 = vld [vmem:[#allocation10 + $0x2a8] sm:$0xff] }
 0x1ad   : > { %3714 = vmatpush1.bf16.msra.mxu0 %v3713_v16  ;;  %v3765_v16 = vpack.c.bf16 %v1993_v4, %v1992_v3  ;;  %v2099_v3 = vld [vmem:[#allocation10 + $0x388] sm:$0xff] }
 0x1ae   : > { %3746 = vmatpush1.bf16.msra.mxu1 %v3745_v17  ;;  %3716 = vmatprep.subr.bf16.mxu0 %v3715_v18  ;;  %v3797_v17 = vpack.c.bf16 %v2025_v8, %v2024_v5  ;;  %v3767_v18 = vpack.c.bf16 %v2011_v10, %v2010_v9  ;;  %v3813_v5 = vpack.c.bf16 %v2033_v63, %v2032_v61  ;;  %v2056_v63 = vld [vmem:[#allocation10 + $0x230] sm:$0xff] }
 0x1af   : > { %3748 = vmatprep.subr.bf16.mxu1 %v3747_v22  ;;  %v3799_v22 = vpack.c.bf16 %v2043_v14, %v2042_v13 }
 0x1b1   : > { %3718 = vmatpush1.bf16.msra.mxu0 %v3717_v28  ;;  %v3769_v28 = vpack.c.bf16 %v1995_v20, %v1994_v19  ;;  %v2050_v20 = vld [vmem:[#allocation10 + $0x200] sm:$0xff] }
 0x1b2   : > { %3750 = vmatpush1.bf16.msra.mxu1 %v3749_v29  ;;  %3752 = vmatprep.subr.bf16.mxu0 %v3751_v30  ;;  %v3801_v29 = vpack.c.bf16 %v2027_v23, %v2026_v21  ;;  %v3771_v30 = vpack.c.bf16 %v2013_v25, %v2012_v24  ;;  %v2051_v21 = vld [vmem:[#allocation10 + $0x208] sm:$0xff]  ;;  %v2068_v25 = vld [vmem:[#allocation10 + $0x290] sm:$0xff] }
 0x1b3   : > { %3784 = vmatprep.subr.bf16.mxu1 %v3783_v34  ;;  %v3803_v34 = vpack.c.bf16 %v2045_v27, %v2044_v26  ;;  %v2083_v24 = vld [vmem:[#allocation10 + $0x308] sm:$0xff]  ;;  %v2069_v26 = vld [vmem:[#allocation10 + $0x298] sm:$0xff] }
 0x1b4   : > { %1893 = vmatmul.mubr.f32.vlgmr.msra.gmra.mrb[14].mxu0 %v4631_v59  ;;  %v3819_v38 = vpack.c.bf16 %v2069_v26, %v2068_v25  ;;  %v2090_v25 = vld [vmem:[#allocation10 + $0x340] sm:$0xff] }
 0x1b5   : > { %1964 = vmatmul.mubr.f32.vlgmr.msra.gmra.mrb[14].mxu1 %v4631_v59  ;;  %3754 = vmatpush3.bf16.msra.mxu0 %v3753_v0  ;;  %v3793_v59 = vpack.c.bf16 %v2023_v58, %v2022_v56  ;;  %v3773_v0 = vpack.c.bf16 %v1997_v32, %v1996_v31  ;;  %v3809_v56 = vpack.c.bf16 %v2031_v47, %v2030_v44  ;;  %v2000_v58 = vld [vmem:[#allocation10 + $0x70] sm:$0xff]  ;;  %v2101_v31 = vld [vmem:[#allocation10 + $0x398] sm:$0xff]  ;;  %v2102_v44 = vld [vmem:[#allocation10 + $0x3a0] sm:$0xff] }
 0x1b6   : > { %3786 = vmatpush3.bf16.msra.mxu1 %v3785_v40  ;;  %3756 = vmatprep.subr.bf16.mxu0 %v3755_v41  ;;  %v3805_v40 = vpack.c.bf16 %v2029_v35, %v2028_v33  ;;  %v3775_v41 = vpack.c.bf16 %v2015_v37, %v2014_v36  ;;  %v3781_v4 = vpack.c.bf16 %v2001_v60, %v2000_v58  ;;  %v2054_v47 = vld [vmem:[#allocation10 + $0x220] sm:$0xff]  ;;  %v2105_v58 = vld [vmem:[#allocation10 + $0x3b8] sm:$0xff] }
 0x1b7   : > { %3788 = vmatprep.subr.bf16.mxu1 %v3787_v45  ;;  %v3817_v35 = vpack.c.bf16 %v2051_v21, %v2050_v20 }
 0x1b9   : > { %3758 = vmatpush3.bf16.msra.mxu0 %v3757_v51 }
 0x1ba   : > { %3790 = vmatpush3.bf16.msra.mxu1 %v3789_v52  ;;  %3760 = vmatprep.subr.bf16.mxu0 %v3759_v53  ;;  %v2048_v52 = vld [vmem:[#allocation10 + $0x1f0] sm:$0xff]  ;;  %v2049_v53 = vld [vmem:[#allocation10 + $0x1f8] sm:$0xff] }
 0x1bb   : > { %3792 = vmatprep.subr.bf16.mxu1 %v3791_v57  ;;  %v3779_v57 = vpack.c.bf16 %v2017_v50, %v2016_v49  ;;  %v3811_v62 = vpack.c.bf16 %v2049_v53, %v2048_v52  ;;  %v2055_v49 = vld [vmem:[#allocation10 + $0x228] sm:$0xff]  ;;  %v2086_v50 = vld [vmem:[#allocation10 + $0x320] sm:$0xff] }
 0x1bc   : > { %v2087_v53 = vld [vmem:[#allocation10 + $0x328] sm:$0xff]  ;;  %v3825_v60 = vpack.c.bf16 %v2055_v49, %v2054_v47  ;;  %v2080_v49 = vld [vmem:[#allocation10 + $0x2f0] sm:$0xff] }
 0x1bd   : > { %3762 = vmatpush3.bf16.msra.mxu0 %v3761_v1  ;;  %v2066_v1 = vld [vmem:[#allocation10 + $0x280] sm:$0xff]  ;;  %v3857_v61 = vpack.c.bf16 %v2087_v53, %v2086_v50  ;;  %v2095_v47 = vld [vmem:[#allocation10 + $0x368] sm:$0xff]  ;;  %v2081_v50 = vld [vmem:[#allocation10 + $0x2f8] sm:$0xff] }
 0x1be   : > { %3794 = vmatpush3.bf16.msra.mxu1 %v3793_v59  ;;  %3764 = vmatprep.subr.bf16.mxu0 %v3763_v2  ;;  %v2067_v59 = vld [vmem:[#allocation10 + $0x288] sm:$0xff]  ;;  %v2098_v2 = vld [vmem:[#allocation10 + $0x380] sm:$0xff]  ;;  %v2113_v53 = vld [vmem:[#allocation10 + $0x3f8] sm:$0xff] }
 0x1bf   : > { %3796 = vmatprep.subr.bf16.mxu1 %v3795_v7  ;;  %v3815_v7 = vpack.c.bf16 %v2067_v59, %v2066_v1  ;;  %v3847_v8 = vpack.c.bf16 %v2099_v3, %v2098_v2  ;;  %v2057_v1 = vld [vmem:[#allocation10 + $0x238] sm:$0xff]  ;;  %v2088_v59 = vld [vmem:[#allocation10 + $0x330] sm:$0xff] }
 0x1c0   : > { %v2089_v3 = vld [vmem:[#allocation10 + $0x338] sm:$0xff]  ;;  %v3829_v20 = vpack.c.bf16 %v2057_v1, %v2056_v63  ;;  %v2130_v1 = vld [vmem:[#allocation10 + $0x480] sm:$0xff] }
 0x1c1   : > { %3766 = vmatpush3.bf16.msra.mxu0 %v3765_v16  ;;  %v3861_v21 = vpack.c.bf16 %v2089_v3, %v2088_v59  ;;  %v2097_v63 = vld [vmem:[#allocation10 + $0x378] sm:$0xff]  ;;  %v2131_v59 = vld [vmem:[#allocation10 + $0x488] sm:$0xff] }
 0x1c2   : > { %3798 = vmatpush3.bf16.msra.mxu1 %v3797_v17  ;;  %3768 = vmatprep.subr.bf16.mxu0 %v3767_v18  ;;  %v2163_v3 = vld [vmem:[#allocation10 + $0x588] sm:$0xff] }
 0x1c3   : > { %3800 = vmatprep.subr.bf16.mxu1 %v3799_v22  ;;  %v2082_v22 = vld [vmem:[#allocation10 + $0x300] sm:$0xff] }
 0x1c4   : > { %v3849_v37 = vpack.c.bf16 %v2083_v24, %v2082_v22  ;;  %v2059_v24 = vld [vmem:[#allocation10 + $0x248] sm:$0xff] }
 0x1c5   : > { %3770 = vmatpush3.bf16.msra.mxu0 %v3769_v28 }
 0x1c6   : > { %3802 = vmatpush3.bf16.msra.mxu1 %v3801_v29  ;;  %3772 = vmatprep.subr.bf16.mxu0 %v3771_v30  ;;  %v2100_v30 = vld [vmem:[#allocation10 + $0x390] sm:$0xff] }
 0x1c7   : > { %v4655_v45 = vpop.f32.mrb[2].mxu0  ;;  %3804 = vmatprep.subr.bf16.mxu1 %v3803_v34 }
 0x1c8   : > { %v4657_v48 = vpop.f32.mrb[3].mxu0  ;;  %v4659_v51 = vpop.f32.mrb[2].mxu1 }
 0x1c9   : > { %v4661_v54 = vpop.f32.mrb[3].mxu1  ;;  %3774 = vmatpush3.bf16.msra.mxu0 %v3773_v0  ;;  %v2053_v0 = vld [vmem:[#allocation10 + $0x218] sm:$0xff] }
 0x1ca   : > { %3806 = vmatpush3.bf16.msra.mxu1 %v3805_v40  ;;  %3776 = vmatprep.subr.bf16.mxu0 %v3775_v41  ;;  %v2084_v40 = vld [vmem:[#allocation10 + $0x310] sm:$0xff]  ;;  %v3851_v41 = vpack.c.bf16 %v2101_v31, %v2100_v30  ;;  %v2109_v31 = vld [vmem:[#allocation10 + $0x3d8] sm:$0xff] }
 0x1cb   : > { %3808 = vmatprep.subr.bf16.mxu1 %v3807_v46  ;;  %v3823_v46 = vpack.c.bf16 %v2071_v43, %v2070_v42  ;;  %v2108_v30 = vld [vmem:[#allocation10 + $0x3d0] sm:$0xff] }
 0x1cd   : > { %3778 = vmatpush3.bf16.msra.mxu0 %v3777_v55  ;;  %v2072_v55 = vld [vmem:[#allocation10 + $0x2b0] sm:$0xff] }
 0x1ce   : > { %3810 = vmatpush3.bf16.msra.mxu1 %v3809_v56  ;;  %3780 = vmatprep.subr.bf16.mxu0 %v3779_v57  ;;  %v2073_v56 = vld [vmem:[#allocation10 + $0x2b8] sm:$0xff]  ;;  %v2104_v57 = vld [vmem:[#allocation10 + $0x3b0] sm:$0xff] }
 0x1cf   : > { %3812 = vmatprep.subr.bf16.mxu1 %v3811_v62  ;;  %v3827_v62 = vpack.c.bf16 %v2073_v56, %v2072_v55  ;;  %v3859_v2 = vpack.c.bf16 %v2105_v58, %v2104_v57  ;;  %v3843_v57 = vpack.c.bf16 %v2081_v50, %v2080_v49  ;;  %v2064_v58 = vld [vmem:[#allocation10 + $0x270] sm:$0xff]  ;;  %v2137_v50 = vld [vmem:[#allocation10 + $0x4b8] sm:$0xff] }
 0x1d0   : > { %v2136_v49 = vld [vmem:[#allocation10 + $0x4b0] sm:$0xff] }
 0x1d1   : > { %3782 = vmatpush3.bf16.msra.mxu0 %v3781_v4  ;;  %v2074_v4 = vld [vmem:[#allocation10 + $0x2c0] sm:$0xff] }
 0x1d2   : > { %3814 = vmatpush3.bf16.msra.mxu1 %v3813_v5  ;;  %3816 = vmatprep.subr.bf16.mxu0 %v3815_v7  ;;  %v2075_v5 = vld [vmem:[#allocation10 + $0x2c8] sm:$0xff]  ;;  %v2106_v7 = vld [vmem:[#allocation10 + $0x3c0] sm:$0xff] }
 0x1d3   : > { %3848 = vmatprep.subr.bf16.mxu1 %v3847_v8  ;;  %v2107_v8 = vld [vmem:[#allocation10 + $0x3c8] sm:$0xff]  ;;  %v3831_v22 = vpack.c.bf16 %v2075_v5, %v2074_v4 }
 0x1d4   : > { %v3863_v26 = vpack.c.bf16 %v2107_v8, %v2106_v7  ;;  %v3879_v7 = vpack.c.bf16 %v2131_v59, %v2130_v1  ;;  %v2114_v8 = vld [vmem:[#allocation10 + $0x400] sm:$0xff]  ;;  %v2139_v59 = vld [vmem:[#allocation10 + $0x4c8] sm:$0xff] }
 0x1d5   : > { %v2138_v1 = vld [vmem:[#allocation10 + $0x4c0] sm:$0xff] }
 0x1e7   : > { %v4663_v9 = vpop.f32.mrb[4].mxu0 }
 0x1e8   : > { %v4665_v10 = vpop.f32.mrb[5].mxu0  ;;  %v4667_v13 = vpop.f32.mrb[4].mxu1 }
 0x1e9   : > { %v4669_v14 = vpop.f32.mrb[5].mxu1 }
 0x207   : > { %v4671_v16 = vpop.f32.mrb[6].mxu0 }
 0x208   : > { %v4673_v17 = vpop.f32.mrb[7].mxu0  ;;  %v4675_v18 = vpop.f32.mrb[6].mxu1 }
 0x209   : > { %v4677_v19 = vpop.f32.mrb[7].mxu1 }
 0x227   : > { %v1468_v23 = vpop.f32.mrb[8].mxu0 }
 0x228   : > { %v1970_v27 = vmul.f32 %v1468_v23, %v4645_v6  ;;  %v1539_v28 = vpop.f32.mrb[8].mxu1  ;;  %v1470_v29 = vpop.f32.mrb[9].mxu0  ;;  %v2085_v6 = vld [vmem:[#allocation10 + $0x318] sm:$0xff]  ;;  %v2058_v23 = vld [vmem:[#allocation10 + $0x240] sm:$0xff] }
 0x229   : > { %v1972_v32 = vmul.f32 %v1539_v28, %v4649_v12  ;;  %v1971_v33 = vmul.f32 %v1470_v29, %v4647_v11  ;;  %v1541_v34 = vpop.f32.mrb[9].mxu1  ;;  %v2103_v12 = vld [vmem:[#allocation10 + $0x3a8] sm:$0xff]  ;;  %v3821_v11 = vpack.c.bf16 %v2053_v0, %v2052_v39  ;;  %v2076_v28 = vld [vmem:[#allocation10 + $0x2d0] sm:$0xff]  ;;  %v2077_v29 = vld [vmem:[#allocation10 + $0x2d8] sm:$0xff] }
 0x22a   : > { %v1973_v36 = vmul.f32 %v1541_v34, %v4651_v15  ;;  %v3853_v15 = vpack.c.bf16 %v2085_v6, %v2084_v40  ;;  %v3855_v52 = vpack.c.bf16 %v2103_v12, %v2102_v44  ;;  %v3835_v34 = vpack.c.bf16 %v2077_v29, %v2076_v28  ;;  %v2093_v39 = vld [vmem:[#allocation10 + $0x358] sm:$0xff]  ;;  %v2078_v0 = vld [vmem:[#allocation10 + $0x2e0] sm:$0xff]  ;;  %v2079_v40 = vld [vmem:[#allocation10 + $0x2e8] sm:$0xff] }
 0x22b   : > { %2306 = vmatprep.mubr.f32.mxu0 %v1971_v33  ;;  %v2111_v6 = vld [vmem:[#allocation10 + $0x3e8] sm:$0xff]  ;;  %v3839_v44 = vpack.c.bf16 %v2079_v40, %v2078_v0  ;;  %v2062_v12 = vld [vmem:[#allocation10 + $0x260] sm:$0xff]  ;;  %v2117_v0 = vld [vmem:[#allocation10 + $0x418] sm:$0xff] }
 0x22c   : > { %2376 = vmatprep.mubr.f32.mxu1 %v1973_v36  ;;  %2307 = vmatmul.mubr.f32.vlgmr.msra.gmra.mrb[16].mxu0 %v1970_v27  ;;  %v2091_v27 = vld [vmem:[#allocation10 + $0x348] sm:$0xff]  ;;  %v2061_v36 = vld [vmem:[#allocation10 + $0x258] sm:$0xff] }
 0x22d   : > { %2377 = vmatmul.mubr.f32.vlgmr.msra.gmra.mrb[16].mxu1 %v1972_v32  ;;  %3818 = vmatpush3.bf16.msra.mxu0 %v3817_v35  ;;  %v3833_v32 = vpack.c.bf16 %v2059_v24, %v2058_v23  ;;  %v3865_v33 = vpack.c.bf16 %v2091_v27, %v2090_v25  ;;  %v2060_v35 = vld [vmem:[#allocation10 + $0x250] sm:$0xff]  ;;  %v2147_v24 = vld [vmem:[#allocation10 + $0x508] sm:$0xff] }
 0x22e   : > { %3850 = vmatpush3.bf16.msra.mxu1 %v3849_v37  ;;  %3820 = vmatprep.subr.bf16.mxu0 %v3819_v38  ;;  %v2092_v37 = vld [vmem:[#allocation10 + $0x350] sm:$0xff]  ;;  %v3867_v38 = vpack.c.bf16 %v2109_v31, %v2108_v30  ;;  %v3837_v42 = vpack.c.bf16 %v2061_v36, %v2060_v35  ;;  %v2165_v31 = vld [vmem:[#allocation10 + $0x598] sm:$0xff] }
 0x22f   : > { %3852 = vmatprep.subr.bf16.mxu1 %v3851_v41  ;;  %v2110_v41 = vld [vmem:[#allocation10 + $0x3e0] sm:$0xff]  ;;  %v3869_v43 = vpack.c.bf16 %v2093_v39, %v2092_v37  ;;  %v2132_v25 = vld [vmem:[#allocation10 + $0x490] sm:$0xff] }
 0x230   : > { %v2164_v30 = vld [vmem:[#allocation10 + $0x590] sm:$0xff] }
 0x231   : > { %3822 = vmatpush3.bf16.msra.mxu0 %v3821_v11  ;;  %v2063_v11 = vld [vmem:[#allocation10 + $0x268] sm:$0xff]  ;;  %v2116_v39 = vld [vmem:[#allocation10 + $0x410] sm:$0xff]  ;;  %v3915_v40 = vpack.c.bf16 %v2165_v31, %v2164_v30 }
 0x232   : > { %3854 = vmatpush3.bf16.msra.mxu1 %v3853_v15  ;;  %3824 = vmatprep.subr.bf16.mxu0 %v3823_v46  ;;  %v2094_v15 = vld [vmem:[#allocation10 + $0x360] sm:$0xff]  ;;  %v3871_v46 = vpack.c.bf16 %v2111_v6, %v2110_v41  ;;  %v3841_v55 = vpack.c.bf16 %v2063_v11, %v2062_v12  ;;  %v2149_v41 = vld [vmem:[#allocation10 + $0x518] sm:$0xff]  ;;  %v2119_v11 = vld [vmem:[#allocation10 + $0x428] sm:$0xff] }
 0x233   : > { %3856 = vmatprep.subr.bf16.mxu1 %v3855_v52  ;;  %v2112_v52 = vld [vmem:[#allocation10 + $0x3f0] sm:$0xff]  ;;  %v3873_v56 = vpack.c.bf16 %v2095_v47, %v2094_v15  ;;  %v2134_v6 = vld [vmem:[#allocation10 + $0x4a0] sm:$0xff]  ;;  %v2151_v47 = vld [vmem:[#allocation10 + $0x528] sm:$0xff] }
 0x234   : > { %v2118_v12 = vld [vmem:[#allocation10 + $0x420] sm:$0xff]  ;;  %v2124_v31 = vld [vmem:[#allocation10 + $0x450] sm:$0xff] }
 0x235   : > { %3826 = vmatpush3.bf16.msra.mxu0 %v3825_v60  ;;  %v2065_v60 = vld [vmem:[#allocation10 + $0x278] sm:$0xff]  ;;  %v2150_v15 = vld [vmem:[#allocation10 + $0x520] sm:$0xff] }
 0x236   : > { %3858 = vmatpush3.bf16.msra.mxu1 %v3857_v61  ;;  %3828 = vmatprep.subr.bf16.mxu0 %v3827_v62  ;;  %v2096_v61 = vld [vmem:[#allocation10 + $0x370] sm:$0xff]  ;;  %v3875_v62 = vpack.c.bf16 %v2113_v53, %v2112_v52  ;;  %v3845_v4 = vpack.c.bf16 %v2065_v60, %v2064_v58  ;;  %v2169_v53 = vld [vmem:[#allocation10 + $0x5b8] sm:$0xff] }
 0x237   : > { %3860 = vmatprep.subr.bf16.mxu1 %v3859_v2  ;;  %v2162_v2 = vld [vmem:[#allocation10 + $0x580] sm:$0xff]  ;;  %v3877_v5 = vpack.c.bf16 %v2097_v63, %v2096_v61  ;;  %v2168_v52 = vld [vmem:[#allocation10 + $0x5b0] sm:$0xff]  ;;  %v2121_v60 = vld [vmem:[#allocation10 + $0x438] sm:$0xff] }
 0x238   : > { %v3911_v23 = vpack.c.bf16 %v2163_v3, %v2162_v2  ;;  %v2120_v58 = vld [vmem:[#allocation10 + $0x430] sm:$0xff]  ;;  %v2153_v63 = vld [vmem:[#allocation10 + $0x538] sm:$0xff]  ;;  %v2170_v2 = vld [vmem:[#allocation10 + $0x5c0] sm:$0xff] }
 0x239   : > { %3830 = vmatpush3.bf16.msra.mxu0 %v3829_v20  ;;  %v2115_v20 = vld [vmem:[#allocation10 + $0x408] sm:$0xff]  ;;  %v2152_v61 = vld [vmem:[#allocation10 + $0x530] sm:$0xff] }
 0x23a   : > { %3862 = vmatpush3.bf16.msra.mxu1 %v3861_v21  ;;  %3832 = vmatprep.subr.bf16.mxu0 %v3831_v22  ;;  %v2146_v21 = vld [vmem:[#allocation10 + $0x500] sm:$0xff]  ;;  %v3881_v35 = vpack.c.bf16 %v2115_v20, %v2114_v8  ;;  %v2171_v3 = vld [vmem:[#allocation10 + $0x5c8] sm:$0xff] }
 0x23b   : > { %3864 = vmatprep.subr.bf16.mxu1 %v3863_v26  ;;  %v2133_v26 = vld [vmem:[#allocation10 + $0x498] sm:$0xff]  ;;  %v3913_v37 = vpack.c.bf16 %v2147_v24, %v2146_v21  ;;  %v2122_v8 = vld [vmem:[#allocation10 + $0x440] sm:$0xff]  ;;  %v2123_v20 = vld [vmem:[#allocation10 + $0x448] sm:$0xff] }
 0x23c   : > { %v2154_v21 = vld [vmem:[#allocation10 + $0x540] sm:$0xff]  ;;  %v2140_v24 = vld [vmem:[#allocation10 + $0x4d0] sm:$0xff] }
 0x23d   : > { %3834 = vmatpush3.bf16.msra.mxu0 %v3833_v32 }
 0x23e   : > { %3866 = vmatpush3.bf16.msra.mxu1 %v3865_v33  ;;  %3836 = vmatprep.subr.bf16.mxu0 %v3835_v34 }
 0x23f   : > { %3868 = vmatprep.subr.bf16.mxu1 %v3867_v38  ;;  %v3883_v38 = vpack.c.bf16 %v2133_v26, %v2132_v25  ;;  %v2141_v25 = vld [vmem:[#allocation10 + $0x4d8] sm:$0xff]  ;;  %v2172_v26 = vld [vmem:[#allocation10 + $0x5d0] sm:$0xff] }
 0x240   : > { %v3899_v30 = vpack.c.bf16 %v2141_v25, %v2140_v24 }
 0x241   : > { %3838 = vmatpush3.bf16.msra.mxu0 %v3837_v42  ;;  %v2167_v42 = vld [vmem:[#allocation10 + $0x5a8] sm:$0xff] }
 0x242   : > { %3870 = vmatpush3.bf16.msra.mxu1 %v3869_v43  ;;  %3840 = vmatprep.subr.bf16.mxu0 %v3839_v44 }
 0x243   : > { %3872 = vmatprep.subr.bf16.mxu1 %v3871_v46 }
 0x245   : > { %3842 = vmatpush3.bf16.msra.mxu0 %v3841_v55  ;;  %v3889_v55 = vpack.c.bf16 %v2119_v11, %v2118_v12  ;;  %v2177_v12 = vld [vmem:[#allocation10 + $0x5f8] sm:$0xff] }
 0x246   : > { %3874 = vmatpush3.bf16.msra.mxu1 %v3873_v56  ;;  %3844 = vmatprep.subr.bf16.mxu0 %v3843_v57  ;;  %v3921_v56 = vpack.c.bf16 %v2151_v47, %v2150_v15  ;;  %v3891_v57 = vpack.c.bf16 %v2137_v50, %v2136_v49  ;;  %v2128_v47 = vld [vmem:[#allocation10 + $0x470] sm:$0xff]  ;;  %v2129_v49 = vld [vmem:[#allocation10 + $0x478] sm:$0xff] }
 0x247   : > { %v1610_v22 = vpop.f32.mrb[10].mxu0  ;;  %3876 = vmatprep.subr.bf16.mxu1 %v3875_v62  ;;  %v3923_v62 = vpack.c.bf16 %v2169_v53, %v2168_v52  ;;  %v2160_v50 = vld [vmem:[#allocation10 + $0x570] sm:$0xff]  ;;  %v2161_v53 = vld [vmem:[#allocation10 + $0x578] sm:$0xff] }
 0x248   : > { %v1974_v27 = vmul.f32 %v1610_v22, %v4655_v45  ;;  %v1681_v28 = vpop.f32.mrb[10].mxu1  ;;  %v1612_v29 = vpop.f32.mrb[11].mxu0  ;;  %v2148_v45 = vld [vmem:[#allocation10 + $0x510] sm:$0xff]  ;;  %v3927_v22 = vpack.c.bf16 %v2171_v3, %v2170_v2 }
 0x249   : > { %v1976_v32 = vmul.f32 %v1681_v28, %v4659_v51  ;;  %v1975_v33 = vmul.f32 %v1612_v29, %v4657_v48  ;;  %v1683_v34 = vpop.f32.mrb[11].mxu1  ;;  %3846 = vmatpush3.bf16.msra.mxu0 %v3845_v4  ;;  %v2135_v51 = vld [vmem:[#allocation10 + $0x4a8] sm:$0xff]  ;;  %v2166_v48 = vld [vmem:[#allocation10 + $0x5a0] sm:$0xff]  ;;  %v3917_v43 = vpack.c.bf16 %v2149_v41, %v2148_v45  ;;  %v3893_v4 = vpack.c.bf16 %v2121_v60, %v2120_v58 }
 0x24a   : > { %v1977_v36 = vmul.f32 %v1683_v34, %v4661_v54  ;;  %3878 = vmatpush3.bf16.msra.mxu1 %v3877_v5  ;;  %3880 = vmatprep.subr.bf16.mxu0 %v3879_v7  ;;  %v3885_v54 = vpack.c.bf16 %v2117_v0, %v2116_v39  ;;  %v3887_v44 = vpack.c.bf16 %v2135_v51, %v2134_v6  ;;  %v2175_v39 = vld [vmem:[#allocation10 + $0x5e8] sm:$0xff]  ;;  %v2126_v41 = vld [vmem:[#allocation10 + $0x460] sm:$0xff] }
 0x24b   : > { %2446 = vmatprep.mubr.f32.mxu0 %v1975_v33  ;;  %3912 = vmatprep.subr.bf16.mxu1 %v3911_v23  ;;  %v3919_v46 = vpack.c.bf16 %v2167_v42, %v2166_v48  ;;  %v3925_v5 = vpack.c.bf16 %v2153_v63, %v2152_v61  ;;  %v3895_v7 = vpack.c.bf16 %v2139_v59, %v2138_v1  ;;  %v2155_v23 = vld [vmem:[#allocation10 + $0x548] sm:$0xff]  ;;  %v2156_v33 = vld [vmem:[#allocation10 + $0x550] sm:$0xff]  ;;  %v2158_v51 = vld [vmem:[#allocation10 + $0x560] sm:$0xff] }
 0x24c   : > { %2516 = vmatprep.mubr.f32.mxu1 %v1977_v36  ;;  %2447 = vmatmul.mubr.f32.vlgmr.msra.gmra.mrb[18].mxu0 %v1974_v27  ;;  %v2173_v27 = vld [vmem:[#allocation10 + $0x5d8] sm:$0xff]  ;;  %v3897_v28 = vpack.c.bf16 %v2123_v20, %v2122_v8  ;;  %v3929_v29 = vpack.c.bf16 %v2155_v23, %v2154_v21  ;;  %v2142_v36 = vld [vmem:[#allocation10 + $0x4e0] sm:$0xff]  ;;  %v2127_v6 = vld [vmem:[#allocation10 + $0x468] sm:$0xff]  ;;  %v3909_v60 = vpack.c.bf16 %v2129_v49, %v2128_v47 }
 0x24d   : > { %2517 = vmatmul.mubr.f32.vlgmr.msra.gmra.mrb[18].mxu1 %v1976_v32  ;;  %3882 = vmatpush3.bf16.msra.mxu0 %v3881_v35  ;;  %v2125_v32 = vld [vmem:[#allocation10 + $0x458] sm:$0xff]  ;;  %v3931_v34 = vpack.c.bf16 %v2173_v27, %v2172_v26  ;;  %v2159_v42 = vld [vmem:[#allocation10 + $0x568] sm:$0xff]  ;;  %v3905_v11 = vpack.c.bf16 %v2127_v6, %v2126_v41  ;;  %v3941_v61 = vpack.c.bf16 %v2161_v53, %v2160_v50  ;;  %v2178_v63 = vld [vmem:[#allocation10 + $0x600] sm:$0xff] }
 0x24e   : > { %3914 = vmatpush3.bf16.msra.mxu1 %v3913_v37  ;;  %3884 = vmatprep.subr.bf16.mxu0 %v3883_v38  ;;  %v2157_v35 = vld [vmem:[#allocation10 + $0x558] sm:$0xff]  ;;  %v2143_v37 = vld [vmem:[#allocation10 + $0x4e8] sm:$0xff]  ;;  %v2174_v38 = vld [vmem:[#allocation10 + $0x5e0] sm:$0xff]  ;;  %v3901_v0 = vpack.c.bf16 %v2125_v32, %v2124_v31  ;;  %v3937_v15 = vpack.c.bf16 %v2159_v42, %v2158_v51 }
 0x24f   : > { %3916 = vmatprep.subr.bf16.mxu1 %v3915_v40  ;;  %v3933_v45 = vpack.c.bf16 %v2157_v35, %v2156_v33  ;;  %v3903_v40 = vpack.c.bf16 %v2143_v37, %v2142_v36  ;;  %v3935_v48 = vpack.c.bf16 %v2175_v39, %v2174_v38  ;;  %v2227_v58 = vld [vmem:[#allocation10 + $0x788] sm:$0xff]  ;;  %v2210_v59 = vld [vmem:[#allocation10 + $0x700] sm:$0xff]  ;;  %v2229_v23 = vld [vmem:[#allocation10 + $0x798] sm:$0xff] }
 0x250   : > { %v2179_v1 = vld [vmem:[#allocation10 + $0x608] sm:$0xff]  ;;  %v2180_v31 = vld [vmem:[#allocation10 + $0x610] sm:$0xff]  ;;  %v2181_v32 = vld [vmem:[#allocation10 + $0x618] sm:$0xff] }
 0x251   : > { %3886 = vmatpush3.bf16.msra.mxu0 %v3885_v54  ;;  %v2144_v54 = vld [vmem:[#allocation10 + $0x4f0] sm:$0xff]  ;;  %v3945_v27 = vpack.c.bf16 %v2179_v1, %v2178_v63  ;;  %v2198_v35 = vld [vmem:[#allocation10 + $0x6a0] sm:$0xff]  ;;  %v2231_v36 = vld [vmem:[#allocation10 + $0x7a8] sm:$0xff] }
 0x252   : > { %3918 = vmatpush3.bf16.msra.mxu1 %v3917_v43  ;;  %3888 = vmatprep.subr.bf16.mxu0 %v3887_v44  ;;  %v2145_v43 = vld [vmem:[#allocation10 + $0x4f8] sm:$0xff]  ;;  %v2176_v44 = vld [vmem:[#allocation10 + $0x5f0] sm:$0xff]  ;;  %v2182_v39 = vld [vmem:[#allocation10 + $0x620] sm:$0xff] }
 0x253   : > { %3920 = vmatprep.subr.bf16.mxu1 %v3919_v46  ;;  %v3907_v46 = vpack.c.bf16 %v2145_v43, %v2144_v54  ;;  %v3939_v52 = vpack.c.bf16 %v2177_v12, %v2176_v44  ;;  %v2215_v41 = vld [vmem:[#allocation10 + $0x728] sm:$0xff]  ;;  %v2200_v6 = vld [vmem:[#allocation10 + $0x6b0] sm:$0xff]  ;;  %v2201_v51 = vld [vmem:[#allocation10 + $0x6b8] sm:$0xff] }
 0x254   : > { %v2233_v42 = vld [vmem:[#allocation10 + $0x7b8] sm:$0xff]  ;;  %v3955_v44 = vpack.c.bf16 %v2201_v51, %v2200_v6  ;;  %v2184_v12 = vld [vmem:[#allocation10 + $0x630] sm:$0xff]  ;;  %v2202_v49 = vld [vmem:[#allocation10 + $0x6c0] sm:$0xff] }
 0x255   : > { %3890 = vmatpush3.bf16.msra.mxu0 %v3889_v55  ;;  %v2194_v55 = vld [vmem:[#allocation10 + $0x680] sm:$0xff]  ;;  %v2217_v47 = vld [vmem:[#allocation10 + $0x738] sm:$0xff]  ;;  %v2203_v50 = vld [vmem:[#allocation10 + $0x6c8] sm:$0xff] }
 0x256   : > { %3922 = vmatpush3.bf16.msra.mxu1 %v3921_v56  ;;  %3892 = vmatprep.subr.bf16.mxu0 %v3891_v57  ;;  %v2195_v56 = vld [vmem:[#allocation10 + $0x688] sm:$0xff]  ;;  %v2226_v57 = vld [vmem:[#allocation10 + $0x780] sm:$0xff]  ;;  %v2204_v1 = vld [vmem:[#allocation10 + $0x6d0] sm:$0xff] }
 0x257   : > { %3924 = vmatprep.subr.bf16.mxu1 %v3923_v62  ;;  %v3943_v62 = vpack.c.bf16 %v2195_v56, %v2194_v55  ;;  %v3975_v3 = vpack.c.bf16 %v2227_v58, %v2226_v57  ;;  %v2235_v53 = vld [vmem:[#allocation10 + $0x7c8] sm:$0xff]  ;;  %v3959_v57 = vpack.c.bf16 %v2203_v50, %v2202_v49  ;;  %v2186_v58 = vld [vmem:[#allocation10 + $0x640] sm:$0xff] }
 0x258   : > { %v2219_v63 = vld [vmem:[#allocation10 + $0x748] sm:$0xff] }
 0x259   : > { %3894 = vmatpush3.bf16.msra.mxu0 %v3893_v4  ;;  %v2211_v4 = vld [vmem:[#allocation10 + $0x708] sm:$0xff] }
 0x25a   : > { %3926 = vmatpush3.bf16.msra.mxu1 %v3925_v5  ;;  %3896 = vmatprep.subr.bf16.mxu0 %v3895_v7  ;;  %v2196_v5 = vld [vmem:[#allocation10 + $0x690] sm:$0xff]  ;;  %v2197_v7 = vld [vmem:[#allocation10 + $0x698] sm:$0xff] }
 0x25b   : > { %3928 = vmatprep.subr.bf16.mxu1 %v3927_v22  ;;  %v2228_v22 = vld [vmem:[#allocation10 + $0x790] sm:$0xff] }
 0x25c   : > { %v3979_v33 = vpack.c.bf16 %v2229_v23, %v2228_v22  ;;  %v2221_v23 = vld [vmem:[#allocation10 + $0x758] sm:$0xff] }
 0x25d   : > { %3898 = vmatpush3.bf16.msra.mxu0 %v3897_v28 }
 0x25e   : > { %3930 = vmatpush3.bf16.msra.mxu1 %v3929_v29  ;;  %3900 = vmatprep.subr.bf16.mxu0 %v3899_v30  ;;  %v3977_v29 = vpack.c.bf16 %v2211_v4, %v2210_v59  ;;  %v3947_v30 = vpack.c.bf16 %v2197_v7, %v2196_v5  ;;  %v2205_v59 = vld [vmem:[#allocation10 + $0x6d8] sm:$0xff] }
 0x25f   : > { %3932 = vmatprep.subr.bf16.mxu1 %v3931_v34  ;;  %v2213_v34 = vld [vmem:[#allocation10 + $0x718] sm:$0xff]  ;;  %v3963_v7 = vpack.c.bf16 %v2205_v59, %v2204_v1 }
 0x261   : > { %3902 = vmatpush3.bf16.msra.mxu0 %v3901_v0  ;;  %v2183_v0 = vld [vmem:[#allocation10 + $0x628] sm:$0xff] }
 0x262   : > { %3934 = vmatpush3.bf16.msra.mxu1 %v3933_v45  ;;  %3904 = vmatprep.subr.bf16.mxu0 %v3903_v40  ;;  %v2214_v45 = vld [vmem:[#allocation10 + $0x720] sm:$0xff]  ;;  %v3953_v54 = vpack.c.bf16 %v2183_v0, %v2182_v39  ;;  %v2192_v39 = vld [vmem:[#allocation10 + $0x670] sm:$0xff]  ;;  %v2193_v0 = vld [vmem:[#allocation10 + $0x678] sm:$0xff] }
 0x263   : > { %3936 = vmatprep.subr.bf16.mxu1 %v3935_v48  ;;  %v2232_v48 = vld [vmem:[#allocation10 + $0x7b0] sm:$0xff]  ;;  %v3985_v43 = vpack.c.bf16 %v2215_v41, %v2214_v45  ;;  %v2225_v41 = vld [vmem:[#allocation10 + $0x778] sm:$0xff]  ;;  %v3973_v6 = vpack.c.bf16 %v2193_v0, %v2192_v39 }
 0x265   : > { %3906 = vmatpush3.bf16.msra.mxu0 %v3905_v11  ;;  %v2185_v11 = vld [vmem:[#allocation10 + $0x638] sm:$0xff] }
 0x266   : > { %3938 = vmatpush3.bf16.msra.mxu1 %v3937_v15  ;;  %3908 = vmatprep.subr.bf16.mxu0 %v3907_v46  ;;  %v2216_v15 = vld [vmem:[#allocation10 + $0x730] sm:$0xff]  ;;  %v3987_v46 = vpack.c.bf16 %v2233_v42, %v2232_v48  ;;  %v3957_v55 = vpack.c.bf16 %v2185_v11, %v2184_v12 }
 0x267   : > { %v1752_v2 = vpop.f32.mrb[12].mxu0  ;;  %3940 = vmatprep.subr.bf16.mxu1 %v3939_v52  ;;  %v2234_v52 = vld [vmem:[#allocation10 + $0x7c0] sm:$0xff]  ;;  %v3989_v56 = vpack.c.bf16 %v2217_v47, %v2216_v15 }
 0x268   : > { %v1978_v8 = vmul.f32 %v1752_v2, %v4663_v9  ;;  %v1823_v20 = vpop.f32.mrb[12].mxu1  ;;  %v1754_v21 = vpop.f32.mrb[13].mxu0  ;;  %v2212_v9 = vld [vmem:[#allocation10 + $0x710] sm:$0xff] }
 0x269   : > { %v1980_v24 = vmul.f32 %v1823_v20, %v4667_v13  ;;  %v1979_v25 = vmul.f32 %v1754_v21, %v4665_v10  ;;  %v1825_v26 = vpop.f32.mrb[13].mxu1  ;;  %3910 = vmatpush3.bf16.msra.mxu0 %v3909_v60  ;;  %v2199_v13 = vld [vmem:[#allocation10 + $0x6a8] sm:$0xff]  ;;  %v2230_v10 = vld [vmem:[#allocation10 + $0x7a0] sm:$0xff]  ;;  %v3981_v37 = vpack.c.bf16 %v2213_v34, %v2212_v9  ;;  %v2236_v2 = vld [vmem:[#allocation10 + $0x7d0] sm:$0xff] }
 0x26a   : > { %v1981_v28 = vmul.f32 %v1825_v26, %v4669_v14  ;;  %3942 = vmatpush3.bf16.msra.mxu1 %v3941_v61  ;;  %3944 = vmatprep.subr.bf16.mxu0 %v3943_v62  ;;  %v3949_v14 = vpack.c.bf16 %v2181_v32, %v2180_v31  ;;  %v3951_v38 = vpack.c.bf16 %v2199_v13, %v2198_v35  ;;  %v2187_v60 = vld [vmem:[#allocation10 + $0x648] sm:$0xff]  ;;  %v2218_v61 = vld [vmem:[#allocation10 + $0x740] sm:$0xff]  ;;  %v2189_v20 = vld [vmem:[#allocation10 + $0x658] sm:$0xff] }
 0x26b   : > { %2586 = vmatprep.mubr.f32.mxu0 %v1979_v25  ;;  %3976 = vmatprep.subr.bf16.mxu1 %v3975_v3  ;;  %v3983_v40 = vpack.c.bf16 %v2231_v36, %v2230_v10  ;;  %v3991_v62 = vpack.c.bf16 %v2235_v53, %v2234_v52  ;;  %v2237_v3 = vld [vmem:[#allocation10 + $0x7d8] sm:$0xff]  ;;  %v3961_v4 = vpack.c.bf16 %v2187_v60, %v2186_v58  ;;  %v2220_v21 = vld [vmem:[#allocation10 + $0x750] sm:$0xff]  ;;  %v2207_v25 = vld [vmem:[#allocation10 + $0x6e8] sm:$0xff] }
 0x26c   : > { %2656 = vmatprep.mubr.f32.mxu1 %v1981_v28  ;;  %2587 = vmatmul.mubr.f32.vlgmr.msra.gmra.mrb[20].mxu0 %v1978_v8  ;;  %v3993_v5 = vpack.c.bf16 %v2219_v63, %v2218_v61  ;;  %v2188_v8 = vld [vmem:[#allocation10 + $0x650] sm:$0xff]  ;;  %v3995_v22 = vpack.c.bf16 %v2237_v3, %v2236_v2  ;;  %v2238_v26 = vld [vmem:[#allocation10 + $0x7e0] sm:$0xff]  ;;  %v2191_v32 = vld [vmem:[#allocation10 + $0x668] sm:$0xff] }
 0x26d   : > { %2657 = vmatmul.mubr.f32.vlgmr.msra.gmra.mrb[20].mxu1 %v1980_v24  ;;  %3946 = vmatpush3.bf16.msra.mxu0 %v3945_v27  ;;  %v2206_v24 = vld [vmem:[#allocation10 + $0x6e0] sm:$0xff]  ;;  %v2239_v27 = vld [vmem:[#allocation10 + $0x7e8] sm:$0xff]  ;;  %v3965_v28 = vpack.c.bf16 %v2189_v20, %v2188_v8  ;;  %v2208_v35 = vld [vmem:[#allocation10 + $0x6f0] sm:$0xff] }
 0x26e   : > { %3978 = vmatpush3.bf16.msra.mxu1 %v3977_v29  ;;  %3948 = vmatprep.subr.bf16.mxu0 %v3947_v30  ;;  %v3997_v29 = vpack.c.bf16 %v2221_v23, %v2220_v21  ;;  %v3967_v30 = vpack.c.bf16 %v2207_v25, %v2206_v24  ;;  %v2190_v31 = vld [vmem:[#allocation10 + $0x660] sm:$0xff]  ;;  %v2223_v34 = vld [vmem:[#allocation10 + $0x768] sm:$0xff]  ;;  %v2209_v13 = vld [vmem:[#allocation10 + $0x6f8] sm:$0xff] }
 0x26f   : > { %3980 = vmatprep.subr.bf16.mxu1 %v3979_v33  ;;  %v2222_v9 = vld [vmem:[#allocation10 + $0x760] sm:$0xff]  ;;  %v3999_v33 = vpack.c.bf16 %v2239_v27, %v2238_v26  ;;  %v2240_v10 = vld [vmem:[#allocation10 + $0x7f0] sm:$0xff]  ;;  %v2241_v36 = vld [vmem:[#allocation10 + $0x7f8] sm:$0xff] }
 0x270   : > { %v4003_v45 = vpack.c.bf16 %v2241_v36, %v2240_v10 }
 0x271   : > { %3950 = vmatpush3.bf16.msra.mxu0 %v3949_v14  ;;  %v3969_v14 = vpack.c.bf16 %v2191_v32, %v2190_v31 }
 0x272   : > { %3982 = vmatpush3.bf16.msra.mxu1 %v3981_v37  ;;  %3952 = vmatprep.subr.bf16.mxu0 %v3951_v38  ;;  %v4001_v37 = vpack.c.bf16 %v2223_v34, %v2222_v9  ;;  %v3971_v38 = vpack.c.bf16 %v2209_v13, %v2208_v35 }
 0x273   : > { %3984 = vmatprep.subr.bf16.mxu1 %v3983_v40  ;;  %v2224_v40 = vld [vmem:[#allocation10 + $0x770] sm:$0xff] }
 0x274   : > { %v4005_v51 = vpack.c.bf16 %v2225_v41, %v2224_v40 }
 0x275   : > { %3954 = vmatpush3.bf16.msra.mxu0 %v3953_v54 }
 0x276   : > { %3986 = vmatpush3.bf16.msra.mxu1 %v3985_v43  ;;  %3956 = vmatprep.subr.bf16.mxu0 %v3955_v44 }
 0x277   : > { %3988 = vmatprep.subr.bf16.mxu1 %v3987_v46 }
 0x279   : > { %3958 = vmatpush3.bf16.msra.mxu0 %v3957_v55 }
 0x27a   : > { %3990 = vmatpush3.bf16.msra.mxu1 %v3989_v56  ;;  %3960 = vmatprep.subr.bf16.mxu0 %v3959_v57 }
 0x27b   : > { %3992 = vmatprep.subr.bf16.mxu1 %v3991_v62 }
 0x27d   : > { %3962 = vmatpush3.bf16.msra.mxu0 %v3961_v4 }
 0x27e   : > { %3994 = vmatpush3.bf16.msra.mxu1 %v3993_v5  ;;  %3964 = vmatprep.subr.bf16.mxu0 %v3963_v7 }
 0x27f   : > { %3996 = vmatprep.subr.bf16.mxu1 %v3995_v22 }
 0x281   : > { %3966 = vmatpush3.bf16.msra.mxu0 %v3965_v28 }
 0x282   : > { %3998 = vmatpush3.bf16.msra.mxu1 %v3997_v29  ;;  %3968 = vmatprep.subr.bf16.mxu0 %v3967_v30 }
 0x283   : > { %4000 = vmatprep.subr.bf16.mxu1 %v3999_v33 }
 0x285   : > { %3970 = vmatpush3.bf16.msra.mxu0 %v3969_v14 }
 0x286   : > { %4002 = vmatpush3.bf16.msra.mxu1 %v4001_v37  ;;  %3972 = vmatprep.subr.bf16.mxu0 %v3971_v38 }
 0x287   : > { %v1894_v48 = vpop.f32.mrb[14].mxu0  ;;  %4004 = vmatprep.subr.bf16.mxu1 %v4003_v45 }
 0x288   : > { %v1982_v42 = vmul.f32 %v1894_v48, %v4671_v16  ;;  %v1965_v54 = vpop.f32.mrb[14].mxu1  ;;  %v1896_v43 = vpop.f32.mrb[15].mxu0 }
 0x289   : > { %v1984_v44 = vmul.f32 %v1965_v54, %v4675_v18  ;;  %v1983_v12 = vmul.f32 %v1896_v43, %v4673_v17  ;;  %v1967_v11 = vpop.f32.mrb[15].mxu1  ;;  %3974 = vmatpush3.bf16.msra.mxu0 %v3973_v6 }
 0x28a   : > { %v1985_v15 = vmul.f32 %v1967_v11, %v4677_v19  ;;  %4006 = vmatpush3.bf16.msra.mxu1 %v4005_v51 }
 0x28b   : > { %2726 = vmatprep.mubr.f32.mxu0 %v1983_v12 }
 0x28c   : > { %2796 = vmatprep.mubr.f32.mxu1 %v1985_v15  ;;  %2727 = vmatmul.mubr.f32.vlgmr.msra.gmra.mrb[22].mxu0 %v1982_v42 }
 0x28d   : > { %2797 = vmatmul.mubr.f32.vlgmr.msra.gmra.mrb[22].mxu1 %v1984_v44 }
 0x2ff   : > { %v2991_v46 = vpop.f32.mrb[16].mxu0 }
 0x300   : > { %v3026_v47 = vpop.f32.mrb[16].mxu1  ;;  %v2992_v49 = vpop.f32.mrb[17].mxu0 }
 0x301   : > { %v2993_v50 = vadd.f32 %v2992_v49, %v2991_v46  ;;  %v3027_v16 = vpop.f32.mrb[17].mxu1 }
 0x302   : > { %v3028_v52 = vadd.f32 %v3027_v16, %v3026_v47 }
 0x304   : > { %v2379_v53 = vadd.f32 %v3028_v52, %v2993_v50 }
 0x31f   : > { %v3061_v55 = vpop.f32.mrb[18].mxu0 }
 0x320   : > { %v3096_v18 = vpop.f32.mrb[18].mxu1  ;;  %v3062_v56 = vpop.f32.mrb[19].mxu0 }
 0x321   : > { %v3063_v17 = vadd.f32 %v3062_v56, %v3061_v55  ;;  %v3097_v57 = vpop.f32.mrb[19].mxu1 }
 0x322   : > { %v3098_v58 = vadd.f32 %v3097_v57, %v3096_v18 }
 0x323   : > { %v2449_v60 = vadd.f32 %v3063_v17, %v2379_v53 }
 0x325   : > { %v2519_v19 = vadd.f32 %v3098_v58, %v2449_v60 }
 0x33f   : > { %v3131_v61 = vpop.f32.mrb[20].mxu0 }
 0x340   : > { %v3166_v62 = vpop.f32.mrb[20].mxu1  ;;  %v3132_v63 = vpop.f32.mrb[21].mxu0 }
 0x341   : > { %v3133_v1 = vadd.f32 %v3132_v63, %v3131_v61  ;;  %v3167_v59 = vpop.f32.mrb[21].mxu1 }
 0x342   : > { %v3168_v2 = vadd.f32 %v3167_v59, %v3166_v62 }
 0x343   : > { %v2589_v3 = vadd.f32 %v3133_v1, %v2519_v19 }
 0x345   : > { %v2659_v4 = vadd.f32 %v3168_v2, %v2589_v3 }
 0x35f   : > { %v3201_v5 = vpop.f32.mrb[22].mxu0 }
 0x360   : > { %v3236_v7 = vpop.f32.mrb[22].mxu1  ;;  %v3202_v8 = vpop.f32.mrb[23].mxu0 }
 0x361   : > { %v3203_v20 = vadd.f32 %v3202_v8, %v3201_v5  ;;  %v3237_v21 = vpop.f32.mrb[23].mxu1 }
 0x362   : > { %v3238_v22 = vadd.f32 %v3237_v21, %v3236_v7 }
 0x363   : > { %v2729_v23 = vadd.f32 %v3203_v20, %v2659_v4 }
 0x365   : > { %v2799_v24 = vadd.f32 %v3238_v22, %v2729_v23 }
 0x367   : > { %2802 = vst [vmem:[%s319_s10] sm:$0xff] %v2799_v24 }
 0x368   : > { %4250 = shalt.err (!%p4247_p10)
}
 0x369   : > { %s4251_s29 = scalar_lea.hbm %s4700_s23, 128  ;;  %s4255_s13 = scalar_lea.hbm %s4749_s5, 256 }
 0x36a   : > { %p4252_p13 = scmp.ne.s32.totalorder %s4700_s23, %s4251_s29  ;;  %p4256_p9 = scmp.lt.u32.totalorder %s4700_s23, %s4749_s5 }
 0x36b   : > { %p4257_p5 = scmp.lt.u32.totalorder %s4255_s13, %s4251_s29  ;;  %p4259_p12 = scmp.lt.u32.totalorder %s4251_s29, %s4700_s23 }
 0x36c   : > { %p4253_p3 = pnand %p4252_p13, %p4772_p1 }
 0x36d   : > { %p4258_p7 = por %p4257_p5, %p4256_p9 }
 0x36e   : > { %p4254_p11 = pneg %p4253_p3 }
 0x36f   : > { %p4260_p2 = por %p4259_p12, %p4258_p7 }
 0x371   : > { %p4261_p4 = pnand %p4260_p2, %p4254_p11 }
 0x373   : > { %4264 = shalt.err (!%p4261_p4)
}
 0x374   : > { %4023 = dma.vmem_to_hbm [thread:$0]  (%p4772_p1), %s4702_s11, 128, %s4700_s23, %s2804_s3  }
 0x375 PF: > { %s2829_s16 = sand.u32 1, %s4303_s18   ;;  %p4773_p0 = scmp.ne.s32.totalorder %s4757_s25, 0 }
 0x376   : > { %p4774_p8 = scmp.ge.s32.totalorder %s4315_s21, 2  ;;  %s2830_s28 = scalar_lea.sflag [#allocation4], %s2829_s16 }
 0x378   : > { %p4043_p6 = pnand %p4774_p8, %p4773_p0 }
 0x37a   : > { %4298 = dma.done.wait (!%p4043_p6), %s2830_s28, 128  }
 0x37b   : > { %4300 = vsyncadd (!%p4043_p6), %s2830_s28, 4294967168  ;;  %p22_p10 = scmp.ge.s32.totalorder %s4492_s14, 4   ;;  %s4775_s18 = smov %s4307_s19 }
 0x37c   : > { %s4776_s19 = smov %s4311_s20  ;;  %s4777_s20 = smov %s4501_s30 }
 0x37d   : > { %s4778_s21 = smov %s4492_s14  ;;  %24 = sbr.rel (!%p22_p10) target bundleno = 11 (0xb), region = 110 }
 0x384   :  { %2835 = vsyncpa [#allocation3], 1 }
 0x385   :  { %2837 = vsyncpa [#allocation3 + $0x1], 1 }
 0x386   :  { %2838 = vsyncpa [#allocation6], 1 }
 0x387   :  { %2840 = vsyncpa [#allocation6 + $0x1], 1 }
 0x388   :  { %2841 = vsyncpa [#allocation9], 1 }
 0x389   :  { %2842 = vsyncpa [#allocation4], 1 }
 0x38a   :  { %2844 = vsyncpa [#allocation4 + $0x1], 1 }

</bundles_post_ra>
